<compile_context>
chip_gen: v5e
topology: v5e:2x2
jax: 0.10.0
libtpu: 0.0.40
codegen_flags: <defaults>
</compile_context>

<pallas_src>
import math
import functools

import numpy as np
import jax
import jax.numpy as jnp
from jax import lax
from jax.experimental import pallas as pl
from jax.experimental.pallas import tpu as pltpu


# ----------------------------------------------------------------------------
# Single fused Pallas kernel: whole Policy5 forward
# ----------------------------------------------------------------------------

def _policy5_kernel(col_ref, act_ref,
                    wconv_ref, bconv_ref, wenc_ref, benc_ref,
                    pei_ref, wqkvi_ref, bqkvi_ref, woi_ref, boi_ref,
                    maski_ref, wcati_ref, ei_ref,
                    wact_ref, bact_ref,
                    pea_ref, wqkva_ref, bqkva_ref, woa_ref, boa_ref,
                    maska_ref, wcata_ref, ea_ref,
                    blin_ref, wpv_ref, bpv_ref,
                    probs_ref, value_ref,
                    *, d_img, d_seq, seq_img, seq_act, n_actions):
    f32 = jnp.float32

    def wdot(a, w_ref):
        # MXU matmul: bf16 operands (weights stored bf16), f32 accumulation.
        return jnp.dot(a.astype(jnp.bfloat16), w_ref[...],
                       preferred_element_type=f32)

    def attn_block(x, wqkv_ref, bqkv_ref, wo_ref, bo_ref, mask_ref, d):
        # Folded-batch single-head attention: x is (B*S, d); the additive mask
        # carries the batch block structure (plus causal mask for the action seq).
        qkv = wdot(x, wqkv_ref) + bqkv_ref[...]              # (B*S, 3d) lane-dense
        q, k, v = qkv[:, :d], qkv[:, d:2 * d], qkv[:, 2 * d:3 * d]
        s = lax.dot_general(q, k, (((1,), (1,)), ((), ())),  # q @ k^T
                            preferred_element_type=f32)
        s = s * (1.0 / math.sqrt(d)) + mask_ref[...]
        m = jnp.max(s, axis=-1, keepdims=True)
        p = jnp.exp(s - m)
        p = p * pl.reciprocal(jnp.sum(p, axis=-1, keepdims=True), approx=True)
        attn = jnp.dot(p, v, preferred_element_type=f32)
        return wdot(attn, wo_ref) + bo_ref[...] + x          # residual on PE'd input

    def flat_head(feat, wcat_ref, e_ref, seq):
        # Branch contribution to the head linear: reshape(B, seq*d) @ W_head done
        # as one lane-dense matmul + tiny constant row-selection matmul, so no
        # (B*seq, d) -> (B, seq*d) relayout is needed inside the kernel.
        u = wdot(feat, wcat_ref)                             # (B*seq, seq*half)
        half = u.shape[1] // seq
        u_stack = jnp.concatenate(
            [u[:, s * half:(s + 1) * half] for s in range(seq)], axis=0)
        return jnp.dot(e_ref[...], u_stack, preferred_element_type=f32)

    # ---- image branch: conv(3x3,s2,p1)+ReLU as block-diag matmul, linear+ReLU,
    #      positional encoding add, transformer block.
    h1 = jnp.maximum(wdot(col_ref[...], wconv_ref) + bconv_ref[...], 0.0)
    feat = jnp.maximum(wdot(h1, wenc_ref) + benc_ref[...], 0.0)
    xi = feat + pei_ref[...]
    feat_i = attn_block(xi, wqkvi_ref, bqkvi_ref, woi_ref, boi_ref,
                        maski_ref, d_img)
    h_img = flat_head(feat_i, wcati_ref, ei_ref, seq_img)

    # ---- action branch: linear+ReLU, positional encoding add, transformer block.
    af = jnp.maximum(wdot(act_ref[...], wact_ref) + bact_ref[...], 0.0)
    xa = af + pea_ref[...]
    feat_a = attn_block(xa, wqkva_ref, bqkva_ref, woa_ref, boa_ref,
                        maska_ref, d_seq)
    h_act = flat_head(feat_a, wcata_ref, ea_ref, seq_act)

    # ---- heads: shared linear+ReLU, fused policy+value matmul.
    h = jnp.maximum(h_img + h_act + blin_ref[...], 0.0)      # (B, half)
    z = wdot(h, wpv_ref) + bpv_ref[...]                      # (B, n_actions+1)
    logits = z[:, :n_actions]
    m = jnp.max(logits, axis=-1, keepdims=True)
    e = jnp.exp(logits - m)
    probs_ref[...] = (e / jnp.sum(e, axis=-1, keepdims=True)).astype(probs_ref.dtype)
    value_ref[...] = z[:, n_actions:n_actions + 1].astype(value_ref.dtype)


def _full_spec(shape):
    return pl.BlockSpec(shape, lambda i: (0,) * len(shape))


# ----------------------------------------------------------------------------
# Plain-JAX glue: image split, im2col, positional encodings, parameter init
# ----------------------------------------------------------------------------

def image_split(x, gh=2, gw=2):
    # x: (N, C, H, W) NCHW  ->  (N, gh*gw, C, H/gh, W/gw)
    N, C, H, W = x.shape
    x = x.reshape(N, C, gh, H // gh, gw, W // gw)
    x = x.transpose(0, 2, 4, 1, 3, 5)
    return x.reshape(N, gh * gw, C, H // gh, W // gw)


def im2col(x, k=3, s=2, p=1):
    # x: (B, C, H, W) NCHW -> (B*Ho*Wo, C*k*k), column order (C, kH, kW)
    B, C, H, W = x.shape
    xp = jnp.pad(x, ((0, 0), (0, 0), (p, p), (p, p)))
    Ho = (H + 2 * p - k) // s + 1
    Wo = (W + 2 * p - k) // s + 1
    cols = []
    for i in range(k):
        for j in range(k):
            cols.append(xp[:, :, i:i + s * Ho:s, j:j + s * Wo:s])   # (B,C,Ho,Wo)
    col = jnp.stack(cols, axis=2)                                   # (B,C,k*k,Ho,Wo)
    col = col.transpose(0, 3, 4, 1, 2).reshape(B * Ho * Wo, C * k * k)
    return col, Ho, Wo


def sinusoidal_pe(seq_len, d):
    pos = np.arange(seq_len)[:, None].astype(np.float32)
    i = np.arange(0, d, 2).astype(np.float32)
    div = np.exp(-math.log(10000.0) * i / d)
    pe = np.zeros((seq_len, d), np.float32)
    pe[:, 0::2] = np.sin(pos * div)
    pe[:, 1::2] = np.cos(pos * div)
    return jnp.asarray(pe)


def orthogonal_init(rng, shape, gain):
    a = rng.standard_normal(size=shape).astype(np.float32)
    flat = a if shape[0] >= shape[1] else a.T
    q, r = np.linalg.qr(flat)
    q = q * np.sign(np.diag(r))
    if shape[0] < shape[1]:
        q = q.T
    return jnp.asarray(gain * q[:shape[0], :shape[1]], dtype=jnp.float32)


def make_params(rng, c_in=4, c_conv=8, conv_spatial=4, d_img=32,
                action_dim=6, d_seq=16, splits=4, act_back=8, num_actions=5):
    def nrm(*shape, s=0.1):
        return jnp.asarray(rng.standard_normal(size=shape).astype(np.float32) * s)

    def attn_params(d):
        return tuple(x for _ in range(4) for x in (nrm(d, d), jnp.zeros((d,), jnp.float32)))

    flat_cat = splits * d_img + act_back * d_seq   # "encoder_out_dim_seq" of the head
    half = flat_cat // 2
    return {
        "conv_w": nrm(c_conv, c_in, 3, 3),                       # PyTorch (Cout,Cin,kH,kW)
        "conv_b": jnp.zeros((c_conv,), jnp.float32),
        "enc_w": nrm(c_conv * conv_spatial * conv_spatial, d_img),
        "enc_b": jnp.zeros((d_img,), jnp.float32),
        "actenc_w": nrm(action_dim, d_seq),
        "actenc_b": jnp.zeros((d_seq,), jnp.float32),
        "tb_img": attn_params(d_img),
        "tb_seq": attn_params(d_seq),
        "lin_w": orthogonal_init(rng, (flat_cat, half), gain=0.01),
        "lin_b": jnp.zeros((half,), jnp.float32),
        "pol_w": orthogonal_init(rng, (half, num_actions), gain=0.01),
        "pol_b": jnp.zeros((num_actions,), jnp.float32),
        "val_w": orthogonal_init(rng, (half, 1), gain=1.0),
        "val_b": jnp.zeros((1,), jnp.float32),
    }


# ----------------------------------------------------------------------------
# Policy5 forward (mirrors the PyTorch forward); one pallas_call
# ----------------------------------------------------------------------------

def policy5_forward(params, x, actions, action_mask=None):
    f32, bf16 = jnp.float32, jnp.bfloat16

    # ---------------- image branch host prep ----------------
    n, C = x.shape[0], x.shape[1]
    xs = image_split(x)
    splits = xs.shape[1]
    B2 = n * splits
    xs = xs.reshape(B2, C, xs.shape[3], xs.shape[4])
    col, Ho, Wo = im2col(xs, k=3, s=2, p=1)                    # (B2*P, C*9)
    P = Ho * Wo
    col_big = col.reshape(B2, P * C * 9).astype(f32)           # rows b2, cols (p, ci,kh,kw)

    c_out = params["conv_w"].shape[0]
    w2d = params["conv_w"].reshape(c_out, -1).T.astype(f32)    # (C*9, c_out)
    # block-diagonal conv weight: one (B2, P*C*9) @ (P*C*9, P*c_out) matmul whose
    # output columns are the NHWC-flattened conv activations.
    wconv_big = jnp.kron(jnp.eye(P, dtype=f32), w2d).astype(bf16)
    bconv_big = jnp.tile(params["conv_b"].astype(f32), P).reshape(1, P * c_out)

    d_img = params["enc_w"].shape[1]
    # permute enc-linear rows from NCHW-flatten (co, p) order to NHWC (p, co) order
    # so it consumes the conv output directly (no transpose anywhere).
    wenc_perm = (params["enc_w"].astype(f32)
                 .reshape(c_out, P, d_img).transpose(1, 0, 2)
                 .reshape(P * c_out, d_img)).astype(bf16)
    benc = params["enc_b"].reshape(1, d_img).astype(f32)

    pe_img = jnp.tile(sinusoidal_pe(splits, d_img), (n, 1)).astype(f32)   # (B2, d_img)
    wq, bq, wk, bk, wv, bv, wo, bo = params["tb_img"]
    wqkv_i = jnp.concatenate([wq, wk, wv], axis=1).astype(bf16)           # (d, 3d)
    bqkv_i = jnp.concatenate([bq, bk, bv]).reshape(1, 3 * d_img).astype(f32)
    wo_i, bo_i = wo.astype(bf16), bo.reshape(1, d_img).astype(f32)
    # batch block-diagonal additive mask (folded batch must not cross-attend)
    mask_i = jnp.asarray(np.where(
        np.kron(np.eye(n), np.ones((splits, splits))) > 0, 0.0, -1e9
    ).astype(np.float32))

    half = params["lin_w"].shape[1]
    w_lin = params["lin_w"].astype(f32)
    wcat_i = (w_lin[:splits * d_img].reshape(splits, d_img, half)
              .transpose(1, 0, 2).reshape(d_img, splits * half)).astype(bf16)
    e_i = np.zeros((n, splits * B2), np.float32)               # row-selection matrix
    for b in range(n):
        for s in range(splits):
            e_i[b, s * B2 + b * splits + s] = 1.0
    e_i = jnp.asarray(e_i)

    # ---------------- action branch host prep ----------------
    n_act, act_back, adim = actions.shape
    B2a = n_act * act_back
    a_in = actions.reshape(B2a, adim).astype(f32)
    d_seq = params["actenc_w"].shape[1]
    wact = params["actenc_w"].astype(bf16)
    bact = params["actenc_b"].reshape(1, d_seq).astype(f32)
    pe_act = jnp.tile(sinusoidal_pe(act_back, d_seq), (n_act, 1)).astype(f32)
    wq2, bq2, wk2, bk2, wv2, bv2, wo2, bo2 = params["tb_seq"]
    wqkv_a = jnp.concatenate([wq2, wk2, wv2], axis=1).astype(bf16)
    bqkv_a = jnp.concatenate([bq2, bk2, bv2]).reshape(1, 3 * d_seq).astype(f32)
    wo_a, bo_a = wo2.astype(bf16), bo2.reshape(1, d_seq).astype(f32)
    blk = np.kron(np.eye(n_act), np.ones((act_back, act_back))) > 0
    if action_mask is None:
        mask_a = jnp.asarray(np.where(blk, 0.0, -1e9).astype(np.float32))
    else:
        mask_a = jnp.where(jnp.asarray(blk),
                           jnp.tile(action_mask.astype(f32), (n_act, n_act)),
                           jnp.float32(-1e9))
    wcat_a = (w_lin[splits * d_img:].reshape(act_back, d_seq, half)
              .transpose(1, 0, 2).reshape(d_seq, act_back * half)).astype(bf16)
    e_a = np.zeros((n_act, act_back * B2a), np.float32)
    for b in range(n_act):
        for t in range(act_back):
            e_a[b, t * B2a + b * act_back + t] = 1.0
    e_a = jnp.asarray(e_a)

    # ---------------- heads host prep ----------------
    b_lin = params["lin_b"].reshape(1, half).astype(f32)
    n_actions = params["pol_w"].shape[1]
    w_pv = jnp.concatenate([params["pol_w"], params["val_w"]], axis=1).astype(bf16)
    b_pv = jnp.concatenate([params["pol_b"], params["val_b"]]).reshape(
        1, n_actions + 1).astype(f32)

    inputs = [col_big, a_in,
              wconv_big, bconv_big, wenc_perm, benc,
              pe_img, wqkv_i, bqkv_i, wo_i, bo_i, mask_i, wcat_i, e_i,
              wact, bact,
              pe_act, wqkv_a, bqkv_a, wo_a, bo_a, mask_a, wcat_a, e_a,
              b_lin, w_pv, b_pv]

    kernel = functools.partial(
        _policy5_kernel, d_img=int(d_img), d_seq=int(d_seq),
        seq_img=int(splits), seq_act=int(act_back), n_actions=int(n_actions))

    probs, value = pl.pallas_call(
        kernel,
        out_shape=(jax.ShapeDtypeStruct((n, n_actions), f32),
                   jax.ShapeDtypeStruct((n, 1), f32)),
        grid=(1,),
        in_specs=[_full_spec(t.shape) for t in inputs],
        out_specs=(_full_spec((n, n_actions)), _full_spec((n, 1))),
        compiler_params=pltpu.CompilerParams(dimension_semantics=("arbitrary",)),
    )(*inputs)

    # TODO(synk): torch.distributions.Categorical (sampling / log_prob) has no Pallas
    # equivalent; return the softmax probabilities and the value head instead.
    return probs, value[:, 0]


# ----------------------------------------------------------------------------
# main
# ----------------------------------------------------------------------------

if __name__ == "__main__":
    key = jax.random.PRNGKey(0)
    kx, ka = jax.random.split(key)

    # images (NCHW): (2, 4, 16, 16) split into 4 patches of (4, 8, 8)
    # actions:       (2, 8, 6)  -> 8-step history of 6-dim action features
    x = jax.random.normal(kx, (2, 4, 16, 16), dtype=jnp.float32)
    actions = jax.random.normal(ka, (2, 8, 6), dtype=jnp.float32)

    # causal additive mask for the action-sequence transformer
    act_back = actions.shape[1]
    causal = np.triu(np.full((act_back, act_back), -1e9, np.float32), k=1)
    action_mask = jnp.asarray(causal)

    params = make_params(np.random.default_rng(0))

    logits, value = jax.jit(policy5_forward)(params, x, actions, action_mask)
    jax.block_until_ready((logits, value))

    assert logits.shape == (2, 5) and value.shape == (2,)
    assert bool(jnp.all(jnp.isfinite(logits))) and bool(jnp.all(jnp.isfinite(value)))
    assert bool(jnp.allclose(jnp.sum(logits, axis=1), 1.0, atol=1e-5))
    print("KERNEL_OK")
</pallas_src>

<mosaic_0001>
module attributes {stable_mosaic.version = 11 : i64} {
  func.func @_policy5_kernel(%arg0: i32, %arg1: memref<8x576xf32, #tpu.memory_space<vmem>>, %arg2: memref<16x6xf32, #tpu.memory_space<vmem>>, %arg3: memref<576x128xbf16, #tpu.memory_space<vmem>>, %arg4: memref<1x128xf32, #tpu.memory_space<vmem>>, %arg5: memref<128x32xbf16, #tpu.memory_space<vmem>>, %arg6: memref<1x32xf32, #tpu.memory_space<vmem>>, %arg7: memref<8x32xf32, #tpu.memory_space<vmem>>, %arg8: memref<32x96xbf16, #tpu.memory_space<vmem>>, %arg9: memref<1x96xf32, #tpu.memory_space<vmem>>, %arg10: memref<32x32xbf16, #tpu.memory_space<vmem>>, %arg11: memref<1x32xf32, #tpu.memory_space<vmem>>, %arg12: memref<8x8xf32, #tpu.memory_space<vmem>>, %arg13: memref<32x512xbf16, #tpu.memory_space<vmem>>, %arg14: memref<2x32xf32, #tpu.memory_space<vmem>>, %arg15: memref<6x16xbf16, #tpu.memory_space<vmem>>, %arg16: memref<1x16xf32, #tpu.memory_space<vmem>>, %arg17: memref<16x16xf32, #tpu.memory_space<vmem>>, %arg18: memref<16x48xbf16, #tpu.memory_space<vmem>>, %arg19: memref<1x48xf32, #tpu.memory_space<vmem>>, %arg20: memref<16x16xbf16, #tpu.memory_space<vmem>>, %arg21: memref<1x16xf32, #tpu.memory_space<vmem>>, %arg22: memref<16x16xf32, #tpu.memory_space<vmem>>, %arg23: memref<16x1024xbf16, #tpu.memory_space<vmem>>, %arg24: memref<2x128xf32, #tpu.memory_space<vmem>>, %arg25: memref<1x128xf32, #tpu.memory_space<vmem>>, %arg26: memref<128x6xbf16, #tpu.memory_space<vmem>>, %arg27: memref<1x6xf32, #tpu.memory_space<vmem>>, %arg28: memref<2x5xf32, #tpu.memory_space<vmem>>, %arg29: memref<2x1xf32, #tpu.memory_space<vmem>>) attributes {dimension_semantics = [#tpu.dimension_semantics<arbitrary>], iteration_bounds = array<i64: 1>, scalar_prefetch = 0 : i64, scratch_operands = 0 : i64, tpu.core_type = #tpu.core_type<tc>, window_params = [{pipeline_mode = #tpu.pipeline_mode<synchronous>, transform_indices = @transform_0, window_bounds = array<i64: 8, 576>}, {pipeline_mode = #tpu.pipeline_mode<synchronous>, transform_indices = @transform_1, window_bounds = array<i64: 16, 6>}, {pipeline_mode = #tpu.pipeline_mode<synchronous>, transform_indices = @transform_2, window_bounds = array<i64: 576, 128>}, {pipeline_mode = #tpu.pipeline_mode<synchronous>, transform_indices = @transform_3, window_bounds = array<i64: 1, 128>}, {pipeline_mode = #tpu.pipeline_mode<synchronous>, transform_indices = @transform_4, window_bounds = array<i64: 128, 32>}, {pipeline_mode = #tpu.pipeline_mode<synchronous>, transform_indices = @transform_5, window_bounds = array<i64: 1, 32>}, {pipeline_mode = #tpu.pipeline_mode<synchronous>, transform_indices = @transform_6, window_bounds = array<i64: 8, 32>}, {pipeline_mode = #tpu.pipeline_mode<synchronous>, transform_indices = @transform_7, window_bounds = array<i64: 32, 96>}, {pipeline_mode = #tpu.pipeline_mode<synchronous>, transform_indices = @transform_8, window_bounds = array<i64: 1, 96>}, {pipeline_mode = #tpu.pipeline_mode<synchronous>, transform_indices = @transform_9, window_bounds = array<i64: 32, 32>}, {pipeline_mode = #tpu.pipeline_mode<synchronous>, transform_indices = @transform_10, window_bounds = array<i64: 1, 32>}, {pipeline_mode = #tpu.pipeline_mode<synchronous>, transform_indices = @transform_11, window_bounds = array<i64: 8, 8>}, {pipeline_mode = #tpu.pipeline_mode<synchronous>, transform_indices = @transform_12, window_bounds = array<i64: 32, 512>}, {pipeline_mode = #tpu.pipeline_mode<synchronous>, transform_indices = @transform_13, window_bounds = array<i64: 2, 32>}, {pipeline_mode = #tpu.pipeline_mode<synchronous>, transform_indices = @transform_14, window_bounds = array<i64: 6, 16>}, {pipeline_mode = #tpu.pipeline_mode<synchronous>, transform_indices = @transform_15, window_bounds = array<i64: 1, 16>}, {pipeline_mode = #tpu.pipeline_mode<synchronous>, transform_indices = @transform_16, window_bounds = array<i64: 16, 16>}, {pipeline_mode = #tpu.pipeline_mode<synchronous>, transform_indices = @transform_17, window_bounds = array<i64: 16, 48>}, {pipeline_mode = #tpu.pipeline_mode<synchronous>, transform_indices = @transform_18, window_bounds = array<i64: 1, 48>}, {pipeline_mode = #tpu.pipeline_mode<synchronous>, transform_indices = @transform_19, window_bounds = array<i64: 16, 16>}, {pipeline_mode = #tpu.pipeline_mode<synchronous>, transform_indices = @transform_20, window_bounds = array<i64: 1, 16>}, {pipeline_mode = #tpu.pipeline_mode<synchronous>, transform_indices = @transform_21, window_bounds = array<i64: 16, 16>}, {pipeline_mode = #tpu.pipeline_mode<synchronous>, transform_indices = @transform_22, window_bounds = array<i64: 16, 1024>}, {pipeline_mode = #tpu.pipeline_mode<synchronous>, transform_indices = @transform_23, window_bounds = array<i64: 2, 128>}, {pipeline_mode = #tpu.pipeline_mode<synchronous>, transform_indices = @transform_24, window_bounds = array<i64: 1, 128>}, {pipeline_mode = #tpu.pipeline_mode<synchronous>, transform_indices = @transform_25, window_bounds = array<i64: 128, 6>}, {pipeline_mode = #tpu.pipeline_mode<synchronous>, transform_indices = @transform_26, window_bounds = array<i64: 1, 6>}, {pipeline_mode = #tpu.pipeline_mode<synchronous>, transform_indices = @transform_27, window_bounds = array<i64: 2, 5>}, {pipeline_mode = #tpu.pipeline_mode<synchronous>, transform_indices = @transform_28, window_bounds = array<i64: 2, 1>}]} {
    %c0 = arith.constant 0 : index
    %c0_0 = arith.constant 0 : index
    %0 = vector.load %arg1[%c0, %c0_0] : memref<8x576xf32, #tpu.memory_space<vmem>>, vector<8x576xf32>
    %1 = arith.truncf %0 : vector<8x576xf32> to vector<8x576xbf16>
    %c0_1 = arith.constant 0 : index
    %c0_2 = arith.constant 0 : index
    %2 = vector.load %arg3[%c0_1, %c0_2] : memref<576x128xbf16, #tpu.memory_space<vmem>>, vector<576x128xbf16>
    %cst = arith.constant dense<0.000000e+00> : vector<8x128xf32>
    %3 = tpu.matmul %1, %2, %cst {dimension_numbers = #tpu.dot_dimension_numbers<[1], [0], [0], [1], [0, 0, 1, 1], [], []>} : vector<8x576xbf16>, vector<576x128xbf16>, vector<8x128xf32> -> vector<8x128xf32>
    %c0_3 = arith.constant 0 : index
    %c0_4 = arith.constant 0 : index
    %4 = vector.load %arg4[%c0_3, %c0_4] : memref<1x128xf32, #tpu.memory_space<vmem>>, vector<1x128xf32>
    %5 = vector.broadcast %4 : vector<1x128xf32> to vector<8x128xf32>
    %6 = arith.addf %3, %5 : vector<8x128xf32>
    %cst_5 = arith.constant 0.000000e+00 : f32
    %7 = vector.broadcast %cst_5 : f32 to vector<8x128xf32>
    %8 = arith.maximumf %6, %7 : vector<8x128xf32>
    %9 = arith.truncf %8 : vector<8x128xf32> to vector<8x128xbf16>
    %c0_6 = arith.constant 0 : index
    %c0_7 = arith.constant 0 : index
    %10 = vector.load %arg5[%c0_6, %c0_7] : memref<128x32xbf16, #tpu.memory_space<vmem>>, vector<128x32xbf16>
    %cst_8 = arith.constant dense<0.000000e+00> : vector<8x32xf32>
    %11 = tpu.matmul %9, %10, %cst_8 {dimension_numbers = #tpu.dot_dimension_numbers<[1], [0], [0], [1], [0, 0, 1, 1], [], []>} : vector<8x128xbf16>, vector<128x32xbf16>, vector<8x32xf32> -> vector<8x32xf32>
    %c0_9 = arith.constant 0 : index
    %c0_10 = arith.constant 0 : index
    %12 = vector.load %arg6[%c0_9, %c0_10] : memref<1x32xf32, #tpu.memory_space<vmem>>, vector<1x32xf32>
    %13 = vector.broadcast %12 : vector<1x32xf32> to vector<8x32xf32>
    %14 = arith.addf %11, %13 : vector<8x32xf32>
    %cst_11 = arith.constant 0.000000e+00 : f32
    %15 = vector.broadcast %cst_11 : f32 to vector<8x32xf32>
    %16 = arith.maximumf %14, %15 : vector<8x32xf32>
    %c0_12 = arith.constant 0 : index
    %c0_13 = arith.constant 0 : index
    %17 = vector.load %arg7[%c0_12, %c0_13] : memref<8x32xf32, #tpu.memory_space<vmem>>, vector<8x32xf32>
    %18 = arith.addf %16, %17 : vector<8x32xf32>
    %19 = arith.truncf %18 : vector<8x32xf32> to vector<8x32xbf16>
    %c0_14 = arith.constant 0 : index
    %c0_15 = arith.constant 0 : index
    %20 = vector.load %arg8[%c0_14, %c0_15] : memref<32x96xbf16, #tpu.memory_space<vmem>>, vector<32x96xbf16>
    %cst_16 = arith.constant dense<0.000000e+00> : vector<8x96xf32>
    %21 = tpu.matmul %19, %20, %cst_16 {dimension_numbers = #tpu.dot_dimension_numbers<[1], [0], [0], [1], [0, 0, 1, 1], [], []>} : vector<8x32xbf16>, vector<32x96xbf16>, vector<8x96xf32> -> vector<8x96xf32>
    %c0_17 = arith.constant 0 : index
    %c0_18 = arith.constant 0 : index
    %22 = vector.load %arg9[%c0_17, %c0_18] : memref<1x96xf32, #tpu.memory_space<vmem>>, vector<1x96xf32>
    %23 = vector.broadcast %22 : vector<1x96xf32> to vector<8x96xf32>
    %24 = arith.addf %21, %23 : vector<8x96xf32>
    %25 = vector.extract_strided_slice %24 {offsets = [0, 0], sizes = [8, 32], strides = [1, 1]} : vector<8x96xf32> to vector<8x32xf32>
    %26 = vector.extract_strided_slice %24 {offsets = [0, 32], sizes = [8, 32], strides = [1, 1]} : vector<8x96xf32> to vector<8x32xf32>
    %27 = vector.extract_strided_slice %24 {offsets = [0, 64], sizes = [8, 32], strides = [1, 1]} : vector<8x96xf32> to vector<8x32xf32>
    %cst_19 = arith.constant dense<0.000000e+00> : vector<8x8xf32>
    %28 = tpu.matmul %25, %26, %cst_19 {dimension_numbers = #tpu.dot_dimension_numbers<[1], [1], [0], [0], [0, 0, 1, 0], [], []>} : vector<8x32xf32>, vector<8x32xf32>, vector<8x8xf32> -> vector<8x8xf32>
    %cst_20 = arith.constant 0.176776692 : f32
    %29 = vector.broadcast %cst_20 : f32 to vector<8x8xf32>
    %30 = arith.mulf %28, %29 : vector<8x8xf32>
    %c0_21 = arith.constant 0 : index
    %c0_22 = arith.constant 0 : index
    %31 = vector.load %arg12[%c0_21, %c0_22] : memref<8x8xf32, #tpu.memory_space<vmem>>, vector<8x8xf32>
    %32 = arith.addf %30, %31 : vector<8x8xf32>
    %cst_23 = arith.constant dense<0xFF800000> : vector<8xf32>
    %33 = vector.multi_reduction <maximumf>, %32, %cst_23 [1] : vector<8x8xf32> to vector<8xf32>
    %34 = vector.shape_cast %33 : vector<8xf32> to vector<8x1xf32>
    %35 = vector.broadcast %34 : vector<8x1xf32> to vector<8x8xf32>
    %36 = arith.subf %32, %35 : vector<8x8xf32>
    %37 = math.exp %36 : vector<8x8xf32>
    %cst_24 = arith.constant dense<0.000000e+00> : vector<8xf32>
    %38 = vector.multi_reduction <add>, %37, %cst_24 [1] : vector<8x8xf32> to vector<8xf32>
    %39 = vector.shape_cast %38 : vector<8xf32> to vector<8x1xf32>
    %40 = tpu.reciprocal %39 {approx = true} : vector<8x1xf32> -> vector<8x1xf32>
    %41 = vector.broadcast %40 : vector<8x1xf32> to vector<8x8xf32>
    %42 = arith.mulf %37, %41 : vector<8x8xf32>
    %cst_25 = arith.constant dense<0.000000e+00> : vector<8x32xf32>
    %43 = tpu.matmul %42, %27, %cst_25 {dimension_numbers = #tpu.dot_dimension_numbers<[1], [0], [0], [1], [0, 0, 1, 1], [], []>} : vector<8x8xf32>, vector<8x32xf32>, vector<8x32xf32> -> vector<8x32xf32>
    %44 = arith.truncf %43 : vector<8x32xf32> to vector<8x32xbf16>
    %c0_26 = arith.constant 0 : index
    %c0_27 = arith.constant 0 : index
    %45 = vector.load %arg10[%c0_26, %c0_27] : memref<32x32xbf16, #tpu.memory_space<vmem>>, vector<32x32xbf16>
    %cst_28 = arith.constant dense<0.000000e+00> : vector<8x32xf32>
    %46 = tpu.matmul %44, %45, %cst_28 {dimension_numbers = #tpu.dot_dimension_numbers<[1], [0], [0], [1], [0, 0, 1, 1], [], []>} : vector<8x32xbf16>, vector<32x32xbf16>, vector<8x32xf32> -> vector<8x32xf32>
    %c0_29 = arith.constant 0 : index
    %c0_30 = arith.constant 0 : index
    %47 = vector.load %arg11[%c0_29, %c0_30] : memref<1x32xf32, #tpu.memory_space<vmem>>, vector<1x32xf32>
    %48 = vector.broadcast %47 : vector<1x32xf32> to vector<8x32xf32>
    %49 = arith.addf %46, %48 : vector<8x32xf32>
    %50 = arith.addf %49, %18 : vector<8x32xf32>
    %51 = arith.truncf %50 : vector<8x32xf32> to vector<8x32xbf16>
    %c0_31 = arith.constant 0 : index
    %c0_32 = arith.constant 0 : index
    %52 = vector.load %arg13[%c0_31, %c0_32] : memref<32x512xbf16, #tpu.memory_space<vmem>>, vector<32x512xbf16>
    %cst_33 = arith.constant dense<0.000000e+00> : vector<8x512xf32>
    %53 = tpu.matmul %51, %52, %cst_33 {dimension_numbers = #tpu.dot_dimension_numbers<[1], [0], [0], [1], [0, 0, 1, 1], [], []>} : vector<8x32xbf16>, vector<32x512xbf16>, vector<8x512xf32> -> vector<8x512xf32>
    %54 = vector.extract_strided_slice %53 {offsets = [0, 0], sizes = [8, 128], strides = [1, 1]} : vector<8x512xf32> to vector<8x128xf32>
    %55 = vector.extract_strided_slice %53 {offsets = [0, 128], sizes = [8, 128], strides = [1, 1]} : vector<8x512xf32> to vector<8x128xf32>
    %56 = vector.extract_strided_slice %53 {offsets = [0, 256], sizes = [8, 128], strides = [1, 1]} : vector<8x512xf32> to vector<8x128xf32>
    %57 = vector.extract_strided_slice %53 {offsets = [0, 384], sizes = [8, 128], strides = [1, 1]} : vector<8x512xf32> to vector<8x128xf32>
    %58 = tpu.concatenate %54, %55, %56, %57 in 0 : vector<8x128xf32>, vector<8x128xf32>, vector<8x128xf32>, vector<8x128xf32> -> vector<32x128xf32>
    %c0_34 = arith.constant 0 : index
    %c0_35 = arith.constant 0 : index
    %59 = vector.load %arg14[%c0_34, %c0_35] : memref<2x32xf32, #tpu.memory_space<vmem>>, vector<2x32xf32>
    %cst_36 = arith.constant dense<0.000000e+00> : vector<2x128xf32>
    %60 = tpu.matmul %59, %58, %cst_36 {dimension_numbers = #tpu.dot_dimension_numbers<[1], [0], [0], [1], [0, 0, 1, 1], [], []>} : vector<2x32xf32>, vector<32x128xf32>, vector<2x128xf32> -> vector<2x128xf32>
    %c0_37 = arith.constant 0 : index
    %c0_38 = arith.constant 0 : index
    %61 = vector.load %arg2[%c0_37, %c0_38] : memref<16x6xf32, #tpu.memory_space<vmem>>, vector<16x6xf32>
    %62 = arith.truncf %61 : vector<16x6xf32> to vector<16x6xbf16>
    %c0_39 = arith.constant 0 : index
    %c0_40 = arith.constant 0 : index
    %63 = vector.load %arg15[%c0_39, %c0_40] : memref<6x16xbf16, #tpu.memory_space<vmem>>, vector<6x16xbf16>
    %cst_41 = arith.constant dense<0.000000e+00> : vector<16x16xf32>
    %64 = tpu.matmul %62, %63, %cst_41 {dimension_numbers = #tpu.dot_dimension_numbers<[1], [0], [0], [1], [0, 0, 1, 1], [], []>} : vector<16x6xbf16>, vector<6x16xbf16>, vector<16x16xf32> -> vector<16x16xf32>
    %c0_42 = arith.constant 0 : index
    %c0_43 = arith.constant 0 : index
    %65 = vector.load %arg16[%c0_42, %c0_43] : memref<1x16xf32, #tpu.memory_space<vmem>>, vector<1x16xf32>
    %66 = vector.broadcast %65 : vector<1x16xf32> to vector<16x16xf32>
    %67 = arith.addf %64, %66 : vector<16x16xf32>
    %cst_44 = arith.constant 0.000000e+00 : f32
    %68 = vector.broadcast %cst_44 : f32 to vector<16x16xf32>
    %69 = arith.maximumf %67, %68 : vector<16x16xf32>
    %c0_45 = arith.constant 0 : index
    %c0_46 = arith.constant 0 : index
    %70 = vector.load %arg17[%c0_45, %c0_46] : memref<16x16xf32, #tpu.memory_space<vmem>>, vector<16x16xf32>
    %71 = arith.addf %69, %70 : vector<16x16xf32>
    %72 = arith.truncf %71 : vector<16x16xf32> to vector<16x16xbf16>
    %c0_47 = arith.constant 0 : index
    %c0_48 = arith.constant 0 : index
    %73 = vector.load %arg18[%c0_47, %c0_48] : memref<16x48xbf16, #tpu.memory_space<vmem>>, vector<16x48xbf16>
    %cst_49 = arith.constant dense<0.000000e+00> : vector<16x48xf32>
    %74 = tpu.matmul %72, %73, %cst_49 {dimension_numbers = #tpu.dot_dimension_numbers<[1], [0], [0], [1], [0, 0, 1, 1], [], []>} : vector<16x16xbf16>, vector<16x48xbf16>, vector<16x48xf32> -> vector<16x48xf32>
    %c0_50 = arith.constant 0 : index
    %c0_51 = arith.constant 0 : index
    %75 = vector.load %arg19[%c0_50, %c0_51] : memref<1x48xf32, #tpu.memory_space<vmem>>, vector<1x48xf32>
    %76 = vector.broadcast %75 : vector<1x48xf32> to vector<16x48xf32>
    %77 = arith.addf %74, %76 : vector<16x48xf32>
    %78 = vector.extract_strided_slice %77 {offsets = [0, 0], sizes = [16, 16], strides = [1, 1]} : vector<16x48xf32> to vector<16x16xf32>
    %79 = vector.extract_strided_slice %77 {offsets = [0, 16], sizes = [16, 16], strides = [1, 1]} : vector<16x48xf32> to vector<16x16xf32>
    %80 = vector.extract_strided_slice %77 {offsets = [0, 32], sizes = [16, 16], strides = [1, 1]} : vector<16x48xf32> to vector<16x16xf32>
    %cst_52 = arith.constant dense<0.000000e+00> : vector<16x16xf32>
    %81 = tpu.matmul %78, %79, %cst_52 {dimension_numbers = #tpu.dot_dimension_numbers<[1], [1], [0], [0], [0, 0, 1, 0], [], []>} : vector<16x16xf32>, vector<16x16xf32>, vector<16x16xf32> -> vector<16x16xf32>
    %cst_53 = arith.constant 2.500000e-01 : f32
    %82 = vector.broadcast %cst_53 : f32 to vector<16x16xf32>
    %83 = arith.mulf %81, %82 : vector<16x16xf32>
    %c0_54 = arith.constant 0 : index
    %c0_55 = arith.constant 0 : index
    %84 = vector.load %arg22[%c0_54, %c0_55] : memref<16x16xf32, #tpu.memory_space<vmem>>, vector<16x16xf32>
    %85 = arith.addf %83, %84 : vector<16x16xf32>
    %cst_56 = arith.constant dense<0xFF800000> : vector<16xf32>
    %86 = vector.multi_reduction <maximumf>, %85, %cst_56 [1] : vector<16x16xf32> to vector<16xf32>
    %87 = vector.shape_cast %86 : vector<16xf32> to vector<16x1xf32>
    %88 = vector.broadcast %87 : vector<16x1xf32> to vector<16x16xf32>
    %89 = arith.subf %85, %88 : vector<16x16xf32>
    %90 = math.exp %89 : vector<16x16xf32>
    %cst_57 = arith.constant dense<0.000000e+00> : vector<16xf32>
    %91 = vector.multi_reduction <add>, %90, %cst_57 [1] : vector<16x16xf32> to vector<16xf32>
    %92 = vector.shape_cast %91 : vector<16xf32> to vector<16x1xf32>
    %93 = tpu.reciprocal %92 {approx = true} : vector<16x1xf32> -> vector<16x1xf32>
    %94 = vector.broadcast %93 : vector<16x1xf32> to vector<16x16xf32>
    %95 = arith.mulf %90, %94 : vector<16x16xf32>
    %cst_58 = arith.constant dense<0.000000e+00> : vector<16x16xf32>
    %96 = tpu.matmul %95, %80, %cst_58 {dimension_numbers = #tpu.dot_dimension_numbers<[1], [0], [0], [1], [0, 0, 1, 1], [], []>} : vector<16x16xf32>, vector<16x16xf32>, vector<16x16xf32> -> vector<16x16xf32>
    %97 = arith.truncf %96 : vector<16x16xf32> to vector<16x16xbf16>
    %c0_59 = arith.constant 0 : index
    %c0_60 = arith.constant 0 : index
    %98 = vector.load %arg20[%c0_59, %c0_60] : memref<16x16xbf16, #tpu.memory_space<vmem>>, vector<16x16xbf16>
    %cst_61 = arith.constant dense<0.000000e+00> : vector<16x16xf32>
    %99 = tpu.matmul %97, %98, %cst_61 {dimension_numbers = #tpu.dot_dimension_numbers<[1], [0], [0], [1], [0, 0, 1, 1], [], []>} : vector<16x16xbf16>, vector<16x16xbf16>, vector<16x16xf32> -> vector<16x16xf32>
    %c0_62 = arith.constant 0 : index
    %c0_63 = arith.constant 0 : index
    %100 = vector.load %arg21[%c0_62, %c0_63] : memref<1x16xf32, #tpu.memory_space<vmem>>, vector<1x16xf32>
    %101 = vector.broadcast %100 : vector<1x16xf32> to vector<16x16xf32>
    %102 = arith.addf %99, %101 : vector<16x16xf32>
    %103 = arith.addf %102, %71 : vector<16x16xf32>
    %104 = arith.truncf %103 : vector<16x16xf32> to vector<16x16xbf16>
    %c0_64 = arith.constant 0 : index
    %c0_65 = arith.constant 0 : index
    %105 = vector.load %arg23[%c0_64, %c0_65] : memref<16x1024xbf16, #tpu.memory_space<vmem>>, vector<16x1024xbf16>
    %cst_66 = arith.constant dense<0.000000e+00> : vector<16x1024xf32>
    %106 = tpu.matmul %104, %105, %cst_66 {dimension_numbers = #tpu.dot_dimension_numbers<[1], [0], [0], [1], [0, 0, 1, 1], [], []>} : vector<16x16xbf16>, vector<16x1024xbf16>, vector<16x1024xf32> -> vector<16x1024xf32>
    %107 = vector.extract_strided_slice %106 {offsets = [0, 0], sizes = [16, 128], strides = [1, 1]} : vector<16x1024xf32> to vector<16x128xf32>
    %108 = vector.extract_strided_slice %106 {offsets = [0, 128], sizes = [16, 128], strides = [1, 1]} : vector<16x1024xf32> to vector<16x128xf32>
    %109 = vector.extract_strided_slice %106 {offsets = [0, 256], sizes = [16, 128], strides = [1, 1]} : vector<16x1024xf32> to vector<16x128xf32>
    %110 = vector.extract_strided_slice %106 {offsets = [0, 384], sizes = [16, 128], strides = [1, 1]} : vector<16x1024xf32> to vector<16x128xf32>
    %111 = vector.extract_strided_slice %106 {offsets = [0, 512], sizes = [16, 128], strides = [1, 1]} : vector<16x1024xf32> to vector<16x128xf32>
    %112 = vector.extract_strided_slice %106 {offsets = [0, 640], sizes = [16, 128], strides = [1, 1]} : vector<16x1024xf32> to vector<16x128xf32>
    %113 = vector.extract_strided_slice %106 {offsets = [0, 768], sizes = [16, 128], strides = [1, 1]} : vector<16x1024xf32> to vector<16x128xf32>
    %114 = vector.extract_strided_slice %106 {offsets = [0, 896], sizes = [16, 128], strides = [1, 1]} : vector<16x1024xf32> to vector<16x128xf32>
    %115 = tpu.concatenate %107, %108, %109, %110, %111, %112, %113, %114 in 0 : vector<16x128xf32>, vector<16x128xf32>, vector<16x128xf32>, vector<16x128xf32>, vector<16x128xf32>, vector<16x128xf32>, vector<16x128xf32>, vector<16x128xf32> -> vector<128x128xf32>
    %c0_67 = arith.constant 0 : index
    %c0_68 = arith.constant 0 : index
    %116 = vector.load %arg24[%c0_67, %c0_68] : memref<2x128xf32, #tpu.memory_space<vmem>>, vector<2x128xf32>
    %cst_69 = arith.constant dense<0.000000e+00> : vector<2x128xf32>
    %117 = tpu.matmul %116, %115, %cst_69 {dimension_numbers = #tpu.dot_dimension_numbers<[1], [0], [0], [1], [0, 0, 1, 1], [], []>} : vector<2x128xf32>, vector<128x128xf32>, vector<2x128xf32> -> vector<2x128xf32>
    %118 = arith.addf %60, %117 : vector<2x128xf32>
    %c0_70 = arith.constant 0 : index
    %c0_71 = arith.constant 0 : index
    %119 = vector.load %arg25[%c0_70, %c0_71] : memref<1x128xf32, #tpu.memory_space<vmem>>, vector<1x128xf32>
    %120 = vector.broadcast %119 : vector<1x128xf32> to vector<2x128xf32>
    %121 = arith.addf %118, %120 : vector<2x128xf32>
    %cst_72 = arith.constant 0.000000e+00 : f32
    %122 = vector.broadcast %cst_72 : f32 to vector<2x128xf32>
    %123 = arith.maximumf %121, %122 : vector<2x128xf32>
    %124 = arith.truncf %123 : vector<2x128xf32> to vector<2x128xbf16>
    %c0_73 = arith.constant 0 : index
    %c0_74 = arith.constant 0 : index
    %125 = vector.load %arg26[%c0_73, %c0_74] : memref<128x6xbf16, #tpu.memory_space<vmem>>, vector<128x6xbf16>
    %cst_75 = arith.constant dense<0.000000e+00> : vector<2x6xf32>
    %126 = tpu.matmul %124, %125, %cst_75 {dimension_numbers = #tpu.dot_dimension_numbers<[1], [0], [0], [1], [0, 0, 1, 1], [], []>} : vector<2x128xbf16>, vector<128x6xbf16>, vector<2x6xf32> -> vector<2x6xf32>
    %c0_76 = arith.constant 0 : index
    %c0_77 = arith.constant 0 : index
    %127 = vector.load %arg27[%c0_76, %c0_77] : memref<1x6xf32, #tpu.memory_space<vmem>>, vector<1x6xf32>
    %128 = vector.broadcast %127 : vector<1x6xf32> to vector<2x6xf32>
    %129 = arith.addf %126, %128 : vector<2x6xf32>
    %130 = vector.extract_strided_slice %129 {offsets = [0, 0], sizes = [2, 5], strides = [1, 1]} : vector<2x6xf32> to vector<2x5xf32>
    %cst_78 = arith.constant dense<0xFF800000> : vector<2xf32>
    %131 = vector.multi_reduction <maximumf>, %130, %cst_78 [1] : vector<2x5xf32> to vector<2xf32>
    %132 = vector.shape_cast %131 : vector<2xf32> to vector<2x1xf32>
    %133 = vector.broadcast %132 : vector<2x1xf32> to vector<2x5xf32>
    %134 = arith.subf %130, %133 : vector<2x5xf32>
    %135 = math.exp %134 : vector<2x5xf32>
    %cst_79 = arith.constant dense<0.000000e+00> : vector<2xf32>
    %136 = vector.multi_reduction <add>, %135, %cst_79 [1] : vector<2x5xf32> to vector<2xf32>
    %137 = vector.shape_cast %136 : vector<2xf32> to vector<2x1xf32>
    %138 = vector.broadcast %137 : vector<2x1xf32> to vector<2x5xf32>
    %139 = arith.divf %135, %138 : vector<2x5xf32>
    %c0_80 = arith.constant 0 : index
    %c0_81 = arith.constant 0 : index
    %140 = vector.load %arg28[%c0_80, %c0_81] : memref<2x5xf32, #tpu.memory_space<vmem>>, vector<2x5xf32>
    tpu.vector_store %arg28[%c0_80, %c0_81], %139 {strides = array<i32>} : memref<2x5xf32, #tpu.memory_space<vmem>>, vector<2x5xf32>,
    %141 = vector.extract_strided_slice %129 {offsets = [0, 5], sizes = [2, 1], strides = [1, 1]} : vector<2x6xf32> to vector<2x1xf32>
    %c0_82 = arith.constant 0 : index
    %c0_83 = arith.constant 0 : index
    %142 = vector.load %arg29[%c0_82, %c0_83] : memref<2x1xf32, #tpu.memory_space<vmem>>, vector<2x1xf32>
    tpu.vector_store %arg29[%c0_82, %c0_83], %141 {strides = array<i32>} : memref<2x1xf32, #tpu.memory_space<vmem>>, vector<2x1xf32>,
    return
  }
  func.func @transform_0(%arg0: i32) -> (i32, i32) {
    %c0_i32 = arith.constant 0 : i32
    %c0_i32_0 = arith.constant 0 : i32
    %c0_i32_1 = arith.constant 0 : i32
    return %c0_i32, %c0_i32_0 : i32, i32
  }
  func.func @transform_1(%arg0: i32) -> (i32, i32) {
    %c0_i32 = arith.constant 0 : i32
    %c0_i32_0 = arith.constant 0 : i32
    %c0_i32_1 = arith.constant 0 : i32
    return %c0_i32, %c0_i32_0 : i32, i32
  }
  func.func @transform_2(%arg0: i32) -> (i32, i32) {
    %c0_i32 = arith.constant 0 : i32
    %c0_i32_0 = arith.constant 0 : i32
    %c0_i32_1 = arith.constant 0 : i32
    return %c0_i32, %c0_i32_0 : i32, i32
  }
  func.func @transform_3(%arg0: i32) -> (i32, i32) {
    %c0_i32 = arith.constant 0 : i32
    %c0_i32_0 = arith.constant 0 : i32
    %c0_i32_1 = arith.constant 0 : i32
    return %c0_i32, %c0_i32_0 : i32, i32
  }
  func.func @transform_4(%arg0: i32) -> (i32, i32) {
    %c0_i32 = arith.constant 0 : i32
    %c0_i32_0 = arith.constant 0 : i32
    %c0_i32_1 = arith.constant 0 : i32
    return %c0_i32, %c0_i32_0 : i32, i32
  }
  func.func @transform_5(%arg0: i32) -> (i32, i32) {
    %c0_i32 = arith.constant 0 : i32
    %c0_i32_0 = arith.constant 0 : i32
    %c0_i32_1 = arith.constant 0 : i32
    return %c0_i32, %c0_i32_0 : i32, i32
  }
  func.func @transform_6(%arg0: i32) -> (i32, i32) {
    %c0_i32 = arith.constant 0 : i32
    %c0_i32_0 = arith.constant 0 : i32
    %c0_i32_1 = arith.constant 0 : i32
    return %c0_i32, %c0_i32_0 : i32, i32
  }
  func.func @transform_7(%arg0: i32) -> (i32, i32) {
    %c0_i32 = arith.constant 0 : i32
    %c0_i32_0 = arith.constant 0 : i32
    %c0_i32_1 = arith.constant 0 : i32
    return %c0_i32, %c0_i32_0 : i32, i32
  }
  func.func @transform_8(%arg0: i32) -> (i32, i32) {
    %c0_i32 = arith.constant 0 : i32
    %c0_i32_0 = arith.constant 0 : i32
    %c0_i32_1 = arith.constant 0 : i32
    return %c0_i32, %c0_i32_0 : i32, i32
  }
  func.func @transform_9(%arg0: i32) -> (i32, i32) {
    %c0_i32 = arith.constant 0 : i32
    %c0_i32_0 = arith.constant 0 : i32
    %c0_i32_1 = arith.constant 0 : i32
    return %c0_i32, %c0_i32_0 : i32, i32
  }
  func.func @transform_10(%arg0: i32) -> (i32, i32) {
    %c0_i32 = arith.constant 0 : i32
    %c0_i32_0 = arith.constant 0 : i32
    %c0_i32_1 = arith.constant 0 : i32
    return %c0_i32, %c0_i32_0 : i32, i32
  }
  func.func @transform_11(%arg0: i32) -> (i32, i32) {
    %c0_i32 = arith.constant 0 : i32
    %c0_i32_0 = arith.constant 0 : i32
    %c0_i32_1 = arith.constant 0 : i32
    return %c0_i32, %c0_i32_0 : i32, i32
  }
  func.func @transform_12(%arg0: i32) -> (i32, i32) {
    %c0_i32 = arith.constant 0 : i32
    %c0_i32_0 = arith.constant 0 : i32
    %c0_i32_1 = arith.constant 0 : i32
    return %c0_i32, %c0_i32_0 : i32, i32
  }
  func.func @transform_13(%arg0: i32) -> (i32, i32) {
    %c0_i32 = arith.constant 0 : i32
    %c0_i32_0 = arith.constant 0 : i32
    %c0_i32_1 = arith.constant 0 : i32
    return %c0_i32, %c0_i32_0 : i32, i32
  }
  func.func @transform_14(%arg0: i32) -> (i32, i32) {
    %c0_i32 = arith.constant 0 : i32
    %c0_i32_0 = arith.constant 0 : i32
    %c0_i32_1 = arith.constant 0 : i32
    return %c0_i32, %c0_i32_0 : i32, i32
  }
  func.func @transform_15(%arg0: i32) -> (i32, i32) {
    %c0_i32 = arith.constant 0 : i32
    %c0_i32_0 = arith.constant 0 : i32
    %c0_i32_1 = arith.constant 0 : i32
    return %c0_i32, %c0_i32_0 : i32, i32
  }
  func.func @transform_16(%arg0: i32) -> (i32, i32) {
    %c0_i32 = arith.constant 0 : i32
    %c0_i32_0 = arith.constant 0 : i32
    %c0_i32_1 = arith.constant 0 : i32
    return %c0_i32, %c0_i32_0 : i32, i32
  }
  func.func @transform_17(%arg0: i32) -> (i32, i32) {
    %c0_i32 = arith.constant 0 : i32
    %c0_i32_0 = arith.constant 0 : i32
    %c0_i32_1 = arith.constant 0 : i32
    return %c0_i32, %c0_i32_0 : i32, i32
  }
  func.func @transform_18(%arg0: i32) -> (i32, i32) {
    %c0_i32 = arith.constant 0 : i32
    %c0_i32_0 = arith.constant 0 : i32
    %c0_i32_1 = arith.constant 0 : i32
    return %c0_i32, %c0_i32_0 : i32, i32
  }
  func.func @transform_19(%arg0: i32) -> (i32, i32) {
    %c0_i32 = arith.constant 0 : i32
    %c0_i32_0 = arith.constant 0 : i32
    %c0_i32_1 = arith.constant 0 : i32
    return %c0_i32, %c0_i32_0 : i32, i32
  }
  func.func @transform_20(%arg0: i32) -> (i32, i32) {
    %c0_i32 = arith.constant 0 : i32
    %c0_i32_0 = arith.constant 0 : i32
    %c0_i32_1 = arith.constant 0 : i32
    return %c0_i32, %c0_i32_0 : i32, i32
  }
  func.func @transform_21(%arg0: i32) -> (i32, i32) {
    %c0_i32 = arith.constant 0 : i32
    %c0_i32_0 = arith.constant 0 : i32
    %c0_i32_1 = arith.constant 0 : i32
    return %c0_i32, %c0_i32_0 : i32, i32
  }
  func.func @transform_22(%arg0: i32) -> (i32, i32) {
    %c0_i32 = arith.constant 0 : i32
    %c0_i32_0 = arith.constant 0 : i32
    %c0_i32_1 = arith.constant 0 : i32
    return %c0_i32, %c0_i32_0 : i32, i32
  }
  func.func @transform_23(%arg0: i32) -> (i32, i32) {
    %c0_i32 = arith.constant 0 : i32
    %c0_i32_0 = arith.constant 0 : i32
    %c0_i32_1 = arith.constant 0 : i32
    return %c0_i32, %c0_i32_0 : i32, i32
  }
  func.func @transform_24(%arg0: i32) -> (i32, i32) {
    %c0_i32 = arith.constant 0 : i32
    %c0_i32_0 = arith.constant 0 : i32
    %c0_i32_1 = arith.constant 0 : i32
    return %c0_i32, %c0_i32_0 : i32, i32
  }
  func.func @transform_25(%arg0: i32) -> (i32, i32) {
    %c0_i32 = arith.constant 0 : i32
    %c0_i32_0 = arith.constant 0 : i32
    %c0_i32_1 = arith.constant 0 : i32
    return %c0_i32, %c0_i32_0 : i32, i32
  }
  func.func @transform_26(%arg0: i32) -> (i32, i32) {
    %c0_i32 = arith.constant 0 : i32
    %c0_i32_0 = arith.constant 0 : i32
    %c0_i32_1 = arith.constant 0 : i32
    return %c0_i32, %c0_i32_0 : i32, i32
  }
  func.func @transform_27(%arg0: i32) -> (i32, i32) {
    %c0_i32 = arith.constant 0 : i32
    %c0_i32_0 = arith.constant 0 : i32
    %c0_i32_1 = arith.constant 0 : i32
    return %c0_i32, %c0_i32_0 : i32, i32
  }
  func.func @transform_28(%arg0: i32) -> (i32, i32) {
    %c0_i32 = arith.constant 0 : i32
    %c0_i32_0 = arith.constant 0 : i32
    %c0_i32_1 = arith.constant 0 : i32
    return %c0_i32, %c0_i32_0 : i32, i32
  }
}

</mosaic_0001>

<bundles_post_ra>
// kernel: tile.21
= control target key start
LH: loop header
LB: loop body
LE: loop exit
PB: predicated region body
PF: predicated region fallthrough
CT: control target
= control target key end

     0   :  { %s28_s0 = inlined_call_operand.vmem [shape: f32[8], index: 0, kind: input, shape index: {}]   ;;  %s29_s1 = inlined_call_operand.vmem [shape: f32[16,8], index: 1, kind: output, shape index: {}]  }
   0x1   :  { %v4_v0 = vld [vmem:[%s28_s0] ss:$0 sm:$0xff] }
   0x2   :  { %5 = vst [vmem:[%s29_s1] sm:$0xff] %v4_v0 }
   0x3   :  { %8 = vst [vmem:[%s29_s1 + $0x8] sm:$0xff] %v4_v0 }

// kernel: tile.22
= control target key start
LH: loop header
LB: loop body
LE: loop exit
PB: predicated region body
PF: predicated region fallthrough
CT: control target
= control target key end

     0   :  { %s131_s10 = smov 120   ;;  %s132_s11 = smov 104   ;;  %vm3_vm0 = vcmask 64512   ;;  %vm9_vm1 = vcmask 1048512   ;;  %vm15_vm2 = vcmask 982912   ;;  %vm21_vm3 = vcmask 917312   ;;  %s207_s0 = inlined_call_operand.vmem [shape: f32[16,8], index: 0, kind: input, shape index: {}]   ;;  %s208_s1 = inlined_call_operand.vmem [shape: f32[1,128], index: 1, kind: output, shape index: {}]  }
   0x1   :  { %v101_v0 = vld [vmem:[%s207_s0 + $0xf] sm:$0x1]   ;;  %v103_v1 = vld [vmem:[%s207_s0 + $0xd] sm:$0x1]   ;;  %v105_v2 = vld [vmem:[%s207_s0 + $0xb] sm:$0x1]  }
   0x2   :  { %7 = vrot.lane.b32.xlu0 %v101_v0, %s131_s10  ;;  %19 = vrot.lane.b32.xlu1 %v103_v1, %s132_s11  ;;  %s133_s14 = smov 88   ;;  %v102_v3 = vld [vmem:[%s207_s0 + $0xe] sm:$0x1]   ;;  %v104_v4 = vld [vmem:[%s207_s0 + $0xc] sm:$0x1]   ;;  %s134_s19 = smov 112  }
   0x3   :  { %31 = vrot.lane.b32.xlu2 %v105_v2, %s133_s14  ;;  %s135_s20 = smov 96   ;;  %v106_v5 = vld [vmem:[%s207_s0 + $0xa] sm:$0x1]   ;;  %s136_s23 = smov 80   ;;  %v107_v6 = vld [vmem:[%s207_s0 + $0x9] sm:$0x1]  }
   0x4   :  { %v108_v7 = vld [vmem:[%s207_s0 + $0x8] sm:$0x1]   ;;  %s137_s28 = smov 72   ;;  %s138_s29 = smov 64   ;;  %v109_v8 = vld [vmem:[%s207_s0 + $0x7] sm:$0x1]  }
   0x5   :  { %s139_s3 = smov 56   ;;  %v110_v9 = vld [vmem:[%s207_s0 + $0x6] sm:$0x1]   ;;  %v111_v10 = vld [vmem:[%s207_s0 + $0x5] sm:$0x1]   ;;  %s140_s8 = smov 48  }
   0x6   :  { %s141_s9 = smov 40   ;;  %v112_v11 = vld [vmem:[%s207_s0 + $0x4] sm:$0x1]   ;;  %s142_s12 = smov 32   ;;  %v113_v12 = vld [vmem:[%s207_s0 + $0x3] sm:$0x1]  }
   0x7   :  { %v114_v13 = vld [vmem:[%s207_s0 + $0x2] sm:$0x1]   ;;  %s143_s17 = smov 24   ;;  %s144_s18 = smov 16   ;;  %v115_v14 = vld [vmem:[%s207_s0 + $0x1] sm:$0x1]  }
   0x8   :  { %s145_s21 = smov 8   ;;  %v2_v15 = vld [vmem:[%s207_s0] sm:$0x1]   ;;  %vm27_vm4 = vcmask 851712   ;;  %vm33_vm5 = vcmask 786112   ;;  %vm39_vm6 = vcmask 720512  }
   0x9   :  { %4 = vst.msk [vmem:[#allocation0] sm:$0x1] %vm3_vm0, %v2_v15   ;;  %vm45_vm7 = vcmask 654912   ;;  %vm51_vm8 = vcmask 589312   ;;  %vm57_vm9 = vcmask 523712   ;;  %vm63_vm10 = vcmask 458112  }
   0xa   :  { %13 = vrot.lane.b32.xlu0 %v102_v3, %s134_s19  ;;  %25 = vrot.lane.b32.xlu1 %v104_v4, %s135_s20  ;;  %vm69_vm11 = vcmask 392512   ;;  %vm75_vm12 = vcmask 326912   ;;  %vm81_vm13 = vcmask 261312   ;;  %vm87_vm14 = vcmask 195712  }
   0xb   :  { %37 = vrot.lane.b32.xlu2 %v106_v5, %s136_s23  ;;  %vm93_vm15 = vcmask 130112  }
  0x12   :  { %43 = vrot.lane.b32.xlu0 %v107_v6, %s137_s28  ;;  %49 = vrot.lane.b32.xlu1 %v108_v7, %s138_s29 }
  0x13   :  { %55 = vrot.lane.b32.xlu2 %v109_v8, %s139_s3 }
  0x1a   :  { %61 = vrot.lane.b32.xlu0 %v110_v9, %s140_s8  ;;  %67 = vrot.lane.b32.xlu1 %v111_v10, %s141_s9 }
  0x1b   :  { %73 = vrot.lane.b32.xlu2 %v112_v11, %s142_s12 }
  0x22   :  { %79 = vrot.lane.b32.xlu0 %v113_v12, %s143_s17  ;;  %85 = vrot.lane.b32.xlu1 %v114_v13, %s144_s18 }
  0x23   :  { %91 = vrot.lane.b32.xlu2 %v115_v14, %s145_s21 }
  0x5d   :  { %v32_v16 = vpop.permute.xlu2 %31  }
  0x65   :  { %v38_v17 = vpop.permute.xlu2 %37  }
  0x6d   :  { %v56_v18 = vpop.permute.xlu2 %55  }
  0x74   :  { %v8_v19 = vpop.permute.xlu0 %7   ;;  %v20_v20 = vpop.permute.xlu1 %19  }
  0x75   :  { %10 = vst.msk [vmem:[#allocation0] sm:$0x1] %vm9_vm1, %v8_v19   ;;  %v74_v21 = vpop.permute.xlu2 %73  }
  0x7c   :  { %v14_v22 = vpop.permute.xlu0 %13   ;;  %v26_v23 = vpop.permute.xlu1 %25  }
  0x7d   :  { %16 = vst.msk [vmem:[#allocation0] sm:$0x1] %vm15_vm2, %v14_v22   ;;  %v92_v24 = vpop.permute.xlu2 %91  }
  0x7e   :  { %22 = vst.msk [vmem:[#allocation0] sm:$0x1] %vm21_vm3, %v20_v20  }
  0x7f   :  { %28 = vst.msk [vmem:[#allocation0] sm:$0x1] %vm27_vm4, %v26_v23  }
  0x80   :  { %34 = vst.msk [vmem:[#allocation0] sm:$0x1] %vm33_vm5, %v32_v16  }
  0x81   :  { %40 = vst.msk [vmem:[#allocation0] sm:$0x1] %vm39_vm6, %v38_v17  }
  0x84   :  { %v44_v25 = vpop.permute.xlu0 %43   ;;  %v50_v26 = vpop.permute.xlu1 %49  }
  0x85   :  { %46 = vst.msk [vmem:[#allocation0] sm:$0x1] %vm45_vm7, %v44_v25  }
  0x86   :  { %52 = vst.msk [vmem:[#allocation0] sm:$0x1] %vm51_vm8, %v50_v26  }
  0x87   :  { %58 = vst.msk [vmem:[#allocation0] sm:$0x1] %vm57_vm9, %v56_v18  }
  0x8c   :  { %v62_v27 = vpop.permute.xlu0 %61   ;;  %v68_v28 = vpop.permute.xlu1 %67  }
  0x8d   :  { %64 = vst.msk [vmem:[#allocation0] sm:$0x1] %vm63_vm10, %v62_v27  }
  0x8e   :  { %70 = vst.msk [vmem:[#allocation0] sm:$0x1] %vm69_vm11, %v68_v28  }
  0x8f   :  { %76 = vst.msk [vmem:[#allocation0] sm:$0x1] %vm75_vm12, %v74_v21  }
  0x94   :  { %v80_v29 = vpop.permute.xlu0 %79   ;;  %v86_v30 = vpop.permute.xlu1 %85  }
  0x95   :  { %82 = vst.msk [vmem:[#allocation0] sm:$0x1] %vm81_vm13, %v80_v29  }
  0x96   :  { %88 = vst.msk [vmem:[#allocation0] sm:$0x1] %vm87_vm14, %v86_v30  }
  0x97   :  { %94 = vst.msk [vmem:[#allocation0] sm:$0x1] %vm93_vm15, %v92_v24  }
  0x9e   :  { %v97_v31 = vld [vmem:[#allocation0] sm:$0x1] }
  0x9f   :  { %100 = vst [vmem:[%s208_s1] sm:$0x1] %v97_v31 }

// kernel: policy5_forward.1
= control target key start
LH: loop header
LB: loop body
LE: loop exit
PB: predicated region body
PF: predicated region fallthrough
CT: control target
= control target key end

     0   :  { %s2365_s0 = inlined_call_operand.vmem [shape: f32[8,576], index: 0, kind: input, shape index: {}]   ;;  %s2366_s1 = inlined_call_operand.vmem [shape: f32[16,6], index: 1, kind: input, shape index: {}]   ;;  %s2367_s2 = inlined_call_operand.vmem [shape: bf16[576,128], index: 2, kind: input, shape index: {}]   ;;  %s2368_s3 = inlined_call_operand.vmem [shape: f32[1,128], index: 3, kind: input, shape index: {}]   ;;  %s2369_s4 = inlined_call_operand.vmem [shape: bf16[128,32], index: 4, kind: input, shape index: {}]   ;;  %s2370_s5 = inlined_call_operand.vmem [shape: f32[1,32], index: 5, kind: input, shape index: {}]   ;;  %s2371_s6 = inlined_call_operand.vmem [shape: f32[8,32], index: 6, kind: input, shape index: {}]   ;;  %s2372_s7 = inlined_call_operand.vmem [shape: bf16[32,96], index: 7, kind: input, shape index: {}]   ;;  %s2373_s8 = inlined_call_operand.vmem [shape: f32[1,96], index: 8, kind: input, shape index: {}]   ;;  %s2374_s9 = inlined_call_operand.vmem [shape: bf16[32,32], index: 9, kind: input, shape index: {}]   ;;  %s2375_s10 = inlined_call_operand.vmem [shape: f32[1,32], index: 10, kind: input, shape index: {}]   ;;  %s2376_s11 = inlined_call_operand.vmem [shape: f32[8,8], index: 11, kind: input, shape index: {}]   ;;  %s2377_s12 = inlined_call_operand.vmem [shape: bf16[32,512], index: 12, kind: input, shape index: {}]   ;;  %s2378_s13 = inlined_call_operand.vmem [shape: f32[2,32], index: 13, kind: input, shape index: {}]   ;;  %s2379_s14 = inlined_call_operand.vmem [shape: bf16[6,16], index: 14, kind: input, shape index: {}]   ;;  %s2380_s15 = inlined_call_operand.vmem [shape: f32[1,16], index: 15, kind: input, shape index: {}]   ;;  %s2381_s16 = inlined_call_operand.vmem [shape: f32[16,16], index: 16, kind: input, shape index: {}]   ;;  %s2382_s17 = inlined_call_operand.vmem [shape: bf16[16,48], index: 17, kind: input, shape index: {}]   ;;  %s2383_s18 = inlined_call_operand.vmem [shape: f32[1,48], index: 18, kind: input, shape index: {}]   ;;  %s2384_s19 = inlined_call_operand.vmem [shape: bf16[16,16], index: 19, kind: input, shape index: {}]   ;;  %s2385_s20 = inlined_call_operand.vmem [shape: f32[1,16], index: 20, kind: input, shape index: {}]   ;;  %s2386_s21 = inlined_call_operand.vmem [shape: f32[16,16], index: 21, kind: input, shape index: {}]   ;;  %s2387_s22 = inlined_call_operand.vmem [shape: bf16[16,1024], index: 22, kind: input, shape index: {}]   ;;  %s2388_s23 = inlined_call_operand.vmem [shape: f32[2,128], index: 23, kind: input, shape index: {}]   ;;  %s2389_s24 = inlined_call_operand.vmem [shape: f32[1,128], index: 24, kind: input, shape index: {}]   ;;  %s2390_s25 = inlined_call_operand.vmem [shape: bf16[128,6], index: 25, kind: input, shape index: {}]   ;;  %s2391_s26 = inlined_call_operand.vmem [shape: f32[1,6], index: 26, kind: input, shape index: {}]   ;;  %s2392_s27 = inlined_call_operand.hbm [shape: f32[2,5], index: 27, kind: output, shape index: {0}]   ;;  %s2393_s28 = inlined_call_operand.vmem [shape: f32[2,1], index: 28, kind: output, shape index: {1}]  }
   0x1   :  { %2401 = sst [smem:[#allocation5_spill]] %s2365_s0 }
   0x2   :  { %2402 = sst [smem:[#allocation6_spill]] %s2366_s1 }
   0x3   :  { %2403 = sst [smem:[#allocation7_spill]] %s2367_s2 }
   0x4   :  { %2404 = sst [smem:[#allocation8_spill]] %s2368_s3 }
   0x5   :  { %2405 = sst [smem:[#allocation9_spill]] %s2369_s4 }
   0x6   :  { %2406 = sst [smem:[#allocation10_spill]] %s2370_s5 }
   0x7   :  { %2407 = sst [smem:[#allocation11_spill]] %s2371_s6 }
   0x8   :  { %2408 = sst [smem:[#allocation12_spill]] %s2372_s7 }
   0x9   :  { %2409 = sst [smem:[#allocation13_spill]] %s2373_s8 }
   0xa   :  { %2410 = sst [smem:[#allocation14_spill]] %s2374_s9 }
   0xb   :  { %2411 = sst [smem:[#allocation15_spill]] %s2375_s10 }
   0xc   :  { %2412 = sst [smem:[#allocation16_spill]] %s2376_s11 }
   0xd   :  { %2413 = sst [smem:[#allocation17_spill]] %s2377_s12 }
   0xe   :  { %s2414_s9 = sld [smem:[#allocation7_spill]] }
  0x14   :  { %v1674_v0 = vld [vmem:[%s2414_s9 + $0x38] sm:$0xff]  ;;  %v1673_v4 = vld [vmem:[%s2414_s9 + $0x30] sm:$0xff]  ;;  %v1672_v8 = vld [vmem:[%s2414_s9 + $0x28] sm:$0xff] }
  0x15   :  { %v1690_v1 = vld [vmem:[%s2414_s9 + $0xb8] sm:$0xff]  ;;  %396 = vmatpush.bf16.msra.mxu0 %v1674_v0  ;;  %v1689_v5 = vld [vmem:[%s2414_s9 + $0xb0] sm:$0xff]  ;;  %v1688_v9 = vld [vmem:[%s2414_s9 + $0xa8] sm:$0xff] }
  0x16   :  { %v1698_v2 = vld [vmem:[%s2414_s9 + $0xf8] sm:$0xff]  ;;  %422 = vmatpush.bf16.msra.mxu2 %v1690_v1  ;;  %v1697_v6 = vld [vmem:[%s2414_s9 + $0xf0] sm:$0xff]  ;;  %v1696_v10 = vld [vmem:[%s2414_s9 + $0xe8] sm:$0xff] }
  0x17   :  { %v1682_v3 = vld [vmem:[%s2414_s9 + $0x78] sm:$0xff]  ;;  %435 = vmatpush.bf16.msra.mxu3 %v1698_v2  ;;  %v1681_v7 = vld [vmem:[%s2414_s9 + $0x70] sm:$0xff]  ;;  %v1680_v11 = vld [vmem:[%s2414_s9 + $0x68] sm:$0xff] }
  0x18   :  { %409 = vmatpush.bf16.msra.mxu1 %v1682_v3  ;;  %v1671_v12 = vld [vmem:[%s2414_s9 + $0x20] sm:$0xff]  ;;  %v1670_v16 = vld [vmem:[%s2414_s9 + $0x18] sm:$0xff] }
  0x19   :  { %397 = vmatpush.bf16.msra.mxu0 %v1673_v4  ;;  %v1687_v13 = vld [vmem:[%s2414_s9 + $0xa0] sm:$0xff]  ;;  %v1686_v17 = vld [vmem:[%s2414_s9 + $0x98] sm:$0xff] }
  0x1a   :  { %423 = vmatpush.bf16.msra.mxu2 %v1689_v5  ;;  %v1695_v14 = vld [vmem:[%s2414_s9 + $0xe0] sm:$0xff]  ;;  %v1694_v18 = vld [vmem:[%s2414_s9 + $0xd8] sm:$0xff] }
  0x1b   :  { %436 = vmatpush.bf16.msra.mxu3 %v1697_v6  ;;  %v1679_v15 = vld [vmem:[%s2414_s9 + $0x60] sm:$0xff]  ;;  %v1678_v19 = vld [vmem:[%s2414_s9 + $0x58] sm:$0xff] }
  0x1c   :  { %410 = vmatpush.bf16.msra.mxu1 %v1681_v7 }
  0x1d   :  { %398 = vmatpush.bf16.msra.mxu0 %v1672_v8 }
  0x1e   :  { %424 = vmatpush.bf16.msra.mxu2 %v1688_v9 }
  0x1f   :  { %437 = vmatpush.bf16.msra.mxu3 %v1696_v10 }
  0x20   :  { %411 = vmatpush.bf16.msra.mxu1 %v1680_v11 }
  0x21   :  { %399 = vmatpush.bf16.msra.mxu0 %v1671_v12 }
  0x22   :  { %425 = vmatpush.bf16.msra.mxu2 %v1687_v13 }
  0x23   :  { %438 = vmatpush.bf16.msra.mxu3 %v1695_v14 }
  0x24   :  { %412 = vmatpush.bf16.msra.mxu1 %v1679_v15 }
  0x25   :  { %34 = vsyncpa [#allocation3], 0  ;;  %400 = vmatpush.bf16.msra.mxu0 %v1670_v16  ;;  %v1669_v20 = vld [vmem:[%s2414_s9 + $0x10] sm:$0xff]  ;;  %v1668_v24 = vld [vmem:[%s2414_s9 + $0x8] sm:$0xff]  ;;  %s2415_s29 = sld [smem:[#allocation5_spill]]  ;;  %vm392_vm0 = vcmask 523264  }
  0x26   :  { %426 = vmatpush.bf16.msra.mxu2 %v1686_v17  ;;  %v1685_v21 = vld [vmem:[%s2414_s9 + $0x90] sm:$0xff]  ;;  %v1684_v25 = vld [vmem:[%s2414_s9 + $0x88] sm:$0xff]  ;;  %v1667_v28 = vld [vmem:[%s2414_s9] sm:$0xff]  ;;  %s2416_s11 = sld [smem:[#allocation9_spill]]  ;;  %vm568_vm1 = vcmask 261120   ;;  %vm615_vm2 = vcmask 64512  }
  0x27   :  { %439 = vmatpush.bf16.msra.mxu3 %v1694_v18  ;;  %v1693_v22 = vld [vmem:[%s2414_s9 + $0xd0] sm:$0xff]  ;;  %v1692_v26 = vld [vmem:[%s2414_s9 + $0xc8] sm:$0xff]  ;;  %v1683_v29 = vld [vmem:[%s2414_s9 + $0x80] sm:$0xff]  ;;  %s2417_s10 = sld [smem:[#allocation8_spill]]  ;;  %s1803_s7 = smov 64   ;;  %vm808_vm3 = vcmask 1042432  }
  0x28   :  { %413 = vmatpush.bf16.msra.mxu1 %v1678_v19  ;;  %v1677_v23 = vld [vmem:[%s2414_s9 + $0x50] sm:$0xff]  ;;  %v1676_v27 = vld [vmem:[%s2414_s9 + $0x48] sm:$0xff]  ;;  %v1691_v30 = vld [vmem:[%s2414_s9 + $0xc0] sm:$0xff]  ;;  %s2418_s2 = sld [smem:[#allocation12_spill]]  ;;  %vm804_vm4 = vcmask 48128   ;;  %vm845_vm5 = vcmask 130048  }
  0x29   :  { %401 = vmatpush.bf16.msra.mxu0 %v1669_v20  ;;  %v1675_v33 = vld [vmem:[%s2414_s9 + $0x40] sm:$0xff]  ;;  %v1702_v36 = vld [vmem:[%s2414_s9 + $0x118] sm:$0xff]  ;;  %v1701_v42 = vld [vmem:[%s2414_s9 + $0x110] sm:$0xff]  ;;  %s2419_s1 = sld [smem:[#allocation10_spill]]  ;;  %vm1291_vm6 = vcmask 33792   ;;  %vm1321_vm7 = vcmask 1024  }
  0x2a   :  { %427 = vmatpush.bf16.msra.mxu2 %v1685_v21  ;;  %v1700_v44 = vld [vmem:[%s2414_s9 + $0x108] sm:$0xff]  ;;  %v1699_v45 = vld [vmem:[%s2414_s9 + $0x100] sm:$0xff]  ;;  %s2420_s5 = sld [smem:[#allocation11_spill]]  ;;  %s1804_s9 = smov 112  }
  0x2b   :  { %440 = vmatpush.bf16.msra.mxu3 %v1693_v22  ;;  %v90_v31 = vld [vmem:[%s2415_s29] sm:$0xff]  ;;  %v92_v32 = vld [vmem:[%s2415_s29 + $0x10] sm:$0xff]  ;;  %v93_v34 = vld [vmem:[%s2415_s29 + $0x18] sm:$0xff]  ;;  %s2421_s6 = sld [smem:[#allocation13_spill]] }
  0x2c   :  { %414 = vmatpush.bf16.msra.mxu1 %v1677_v23  ;;  %v91_v35 = vld [vmem:[%s2415_s29 + $0x8] sm:$0xff]  ;;  %v1710_v37 = vld [vmem:[%s2416_s11 + $0x38] sm:$0xff]  ;;  %v95_v38 = vpack.c.bf16 %v90_v31, %v90_v31  ;;  %v97_v39 = vpack.c.bf16 %v92_v32, %v92_v32  ;;  %v98_v40 = vpack.c.bf16 %v93_v34, %v93_v34  ;;  %v1709_v43 = vld [vmem:[%s2416_s11 + $0x30] sm:$0xff]  ;;  %s2424_s30 = sld [smem:[#allocation17_spill]] }
  0x2d   :  { %402 = vmatpush.bf16.msra.mxu0 %v1668_v24  ;;  %v96_v41 = vpack.c.bf16 %v91_v35, %v91_v35  ;;  %v94_v46 = vld [vmem:[%s2415_s29 + $0x20] sm:$0xff]  ;;  %v1708_v48 = vld [vmem:[%s2416_s11 + $0x28] sm:$0xff]  ;;  %v1706_v50 = vld [vmem:[%s2416_s11 + $0x18] sm:$0xff]  ;;  %s2423_s29 = sld [smem:[#allocation14_spill]] }
  0x2e   :  { %428 = vmatpush.bf16.msra.mxu2 %v1684_v25  ;;  %v99_v47 = vpack.c.bf16 %v94_v46, %v94_v46  ;;  %v1707_v49 = vld [vmem:[%s2416_s11 + $0x20] sm:$0xff]  ;;  %v1705_v51 = vld [vmem:[%s2416_s11 + $0x10] sm:$0xff]  ;;  %v1704_v52 = vld [vmem:[%s2416_s11 + $0x8] sm:$0xff]  ;;  %s2425_s12 = sld [smem:[#allocation15_spill]] }
  0x2f   :  { %441 = vmatpush.bf16.msra.mxu3 %v1692_v26  ;;  %v1703_v53 = vld [vmem:[%s2416_s11] sm:$0xff]  ;;  %v1712_v8 = vld [vmem:[%s2418_s2 + $0x8] sm:$0xff]  ;;  %s2426_s4 = sld [smem:[#allocation6_spill]] }
  0x30   :  { %415 = vmatpush.bf16.msra.mxu1 %v1676_v27  ;;  %v1751_v55 = vld [vmem:[%s2417_s10] ss:$0 sm:$0xff]  ;;  %s1802_s10 = smov 96  }
  0x31   :  { %403 = vmatpush.bf16.msra.mxu0 %v1667_v28  ;;  %v1711_v9 = vld [vmem:[%s2418_s2] sm:$0xff]  ;;  %s2422_s2 = sld [smem:[#allocation16_spill]] }
  0x32   :  { %429 = vmatpush.bf16.msra.mxu2 %v1683_v29  ;;  %v1752_v10 = vld [vmem:[%s2419_s1] ss:$0 sm:$0xff]  ;;  %v1567_v46 = vld [vmem:[%s2424_s30 + $0x28] sm:$0xf] }
  0x33   :  { %442 = vmatpush.bf16.msra.mxu3 %v1691_v30  ;;  %v545_v13 = vld [vmem:[%s2420_s5] sm:$0xff] }
  0x34   :  { %416 = vmatpush.bf16.msra.mxu1 %v1675_v33  ;;  %404 = vmatmul.bf16.vlgmr.msra.gmra.mxu0 %v95_v38  ;;  %v1753_v18 = vld [vmem:[%s2421_s6] ss:$0 sm:$0xff]  ;;  %v1714_v33 = vld [vmem:[%s2423_s29 + $0x8] sm:$0xff] }
  0x35   :  { %452 = vmatpush.bf16.msrb.mxu0 %v1702_v36  ;;  %430 = vmatmul.bf16.vlgmr.msra.gmra.mxu2 %v97_v39  ;;  %v1713_v38 = vld [vmem:[%s2423_s29] sm:$0xff] }
  0x36   :  { %443 = vmatmul.bf16.vlgmr.msra.gmra.mxu3 %v98_v40  ;;  %578 = vmatpush.bf16.msrb.mxu2 %v1712_v8 }
  0x37   :  { %417 = vmatmul.bf16.vlgmr.msra.gmra.mxu1 %v96_v41  ;;  %v613_v24 = vld [vmem:[%s2422_s2] sm:$0xff] }
  0x38   :  { %531 = vmatpush.bf16.msrb.mxu1 %v1710_v37  ;;  %v1559_v41 = vld [vmem:[%s2424_s30 + $0x20] sm:$0xf] }
  0x39   :  { %453 = vmatpush.bf16.msrb.mxu0 %v1701_v42  ;;  %v1721_v42 = vld [vmem:[%s2424_s30 + $0x2c] sm:$0xf0] }
  0x3a   :  { %579 = vmatpush.bf16.msrb.mxu2 %v1711_v9  ;;  %v796_v9 = vld [vmem:[%s2426_s4] sm:$0xff] }
  0x3c   :  { %532 = vmatpush.bf16.msrb.mxu1 %v1709_v43  ;;  %v1719_v43 = vld [vmem:[%s2424_s30 + $0x24] sm:$0xf] }
  0x3d   :  { %454 = vmatpush.bf16.msrb.mxu0 %v1700_v44  ;;  %v1560_v44 = vor.u32 %v1721_v42, %v1559_v41  ;;  %v902_v41 = vld [vmem:[%s2386_s21] sm:$0xff] }
  0x3f   :  { %749 = vmatpush.bf16.msra.mxu2 %v1560_v44 }
  0x40   :  { %533 = vmatpush.bf16.msrb.mxu1 %v1708_v48 }
  0x41   :  { %455 = vmatpush.bf16.msrb.mxu0 %v1699_v45  ;;  %v1561_v45 = vld [vmem:[%s2424_s30 + $0x30] sm:$0xf0] }
  0x42   :  { %v1564_v48 = vor.u32 %v1719_v43, %v1561_v45 }
  0x44   :  { %1487 = vmatmul.msk.bf16.vlgmr.msrb.gmra.mxu0 %vm392_vm0, %v99_v47  ;;  %534 = vmatpush.bf16.msrb.mxu1 %v1707_v49  ;;  %v1722_v47 = vld [vmem:[%s2424_s30 + $0x34] sm:$0xf0] }
  0x45   :  { %683 = vmatpush.bf16.msra.mxu0 %v1714_v33  ;;  %v1568_v49 = vor.u32 %v1722_v47, %v1567_v46  ;;  %v903_v46 = vld [vmem:[%s2386_s21 + $0x8] sm:$0xff] }
  0x48   :  { %535 = vmatpush.bf16.msrb.mxu1 %v1706_v50  ;;  %v1543_v50 = vld [vmem:[%s2424_s30] sm:$0xf] }
  0x49   :  { %684 = vmatpush.bf16.msra.mxu0 %v1713_v38 }
  0x4c   :  { %536 = vmatpush.bf16.msrb.mxu1 %v1705_v51  ;;  %v1717_v51 = vld [vmem:[%s2424_s30 + $0xc] sm:$0xf0] }
  0x4d   :  { %775 = vmatpush.bf16.msrb.mxu0 %v1568_v49 }
  0x50   :  { %537 = vmatpush.bf16.msrb.mxu1 %v1704_v52  ;;  %v1715_v52 = vld [vmem:[%s2424_s30 + $0x4] sm:$0xf] }
  0x54   :  { %538 = vmatpush.bf16.msrb.mxu1 %v1703_v53  ;;  %v1544_v53 = vor.u32 %v1717_v51, %v1543_v50 }
  0x56   :  { %750 = vmatpush.bf16.msra.mxu2 %v1544_v53 }
  0xb1   :  { %v405_v54 = vpop.f32.mrf.mxu0 }
  0xb2   :  { %v406_v57 = vadd.f32 %v1751_v55, %v405_v54  ;;  %v1545_v54 = vld [vmem:[%s2424_s30 + $0x10] sm:$0xf0]  ;;  %v1551_v55 = vld [vmem:[%s2424_s30 + $0x8] sm:$0xf] }
  0xb4   :  { %v418_v56 = vpop.f32.mrf.mxu1 }
  0xb5   :  { %v419_v61 = vadd.f32 %v418_v56, %v406_v57  ;;  %v1718_v56 = vld [vmem:[%s2424_s30 + $0x14] sm:$0xf0]  ;;  %v1548_v57 = vor.u32 %v1715_v52, %v1545_v54 }
  0xb8   :  { %v431_v58 = vpop.f32.mrf.mxu2 }
  0xb9   :  { %v444_v59 = vpop.f32.mrf.mxu3  ;;  %v407_v60 = vpop.f32.mrf.mxu0  ;;  %v432_v63 = vadd.f32 %v431_v58, %v419_v61  ;;  %v1552_v58 = vor.u32 %v1718_v56, %v1551_v55  ;;  %v1716_v61 = vld [vmem:[%s2424_s30 + $0xc] sm:$0xf] }
  0xba   :  { %v1569_v60 = vld [vmem:[%s2424_s30 + $0x38] sm:$0xf0] }
  0xbb   :  { %v445_v1 = vadd.f32 %v444_v59, %v432_v63  ;;  %776 = vmatpush.bf16.msrb.mxu0 %v1552_v58  ;;  %v1720_v59 = vld [vmem:[%s2424_s30 + $0x2c] sm:$0xf]  ;;  %v1553_v63 = vld [vmem:[%s2424_s30 + $0x18] sm:$0xf0] }
  0xbc   :  { %v420_v62 = vpop.f32.mrf.mxu1 }
  0xbd   :  { %v1572_v62 = vor.u32 %v1720_v59, %v1569_v60 }
  0xc0   :  { %v433_v0 = vpop.f32.mrf.mxu2 }
  0xc1   :  { %v446_v2 = vpop.f32.mrf.mxu3  ;;  %v457_v3 = vpop.f32.mrf.mxu0  ;;  %v1556_v0 = vor.u32 %v1716_v61, %v1553_v63 }
  0xc2   :  { %v458_v4 = vadd.f32 %v457_v3, %v445_v1  ;;  %v1754_v1 = vld [vmem:[%s2425_s12] ss:$0 sm:$0xff] }
  0xc4   :  { %v461_v5 = vmax.f32 %v458_v4, 0.0  ;;  %v799_v4 = vld [vmem:[%s2379_s14] sm:$0x7] }
  0xc6   :  { %v462_v6 = vpack.c.bf16 %v461_v5, %v461_v5 }
  0xc8   :  { %539 = vmatmul.bf16.vlgmr.msrb.gmra.mxu1 %v462_v6 }
  0xc9   :  { %v459_v7 = vpop.f32.mrf.mxu0 }
  0xca   :  { %v810_v7 = vsel %vm808_vm3, %v799_v4, 0 }
 0x145   :  { %v540_v11 = vpop.f32.mrf.mxu1 }
 0x146   :  { %v541_v12 = vadd.f32 %v1752_v10, %v540_v11  ;;  %v797_v10 = vld [vmem:[%s2426_s4 + $0x8] sm:$0xff] }
 0x147   :  { %v798_v11 = vpack.c.bf16 %v797_v10, %v796_v9  ;;  %v1725_v10 = vld [vmem:[%s2387_s22 + $0x4] sm:$0xf] }
 0x148   :  { %v544_v14 = vmax.f32 %v541_v12, 0.0 }
 0x14a   :  { %v2114_v15 = vadd.f32 %v545_v13, %v544_v14 }
 0x14c   :  { %v547_v16 = vpack.c.bf16 %v2114_v15, %v2114_v15 }
 0x14d   :  { %v542_v17 = vpop.f32.mrf.mxu1 }
 0x14e   :  { %1528 = vmatmul.msk.bf16.vlgmr.msrb.gmra.mxu2 %vm568_vm1, %v547_v16 }
 0x14f   :  { %788 = vmatpush.bf16.msrb.mxu2 %v1572_v62 }
 0x153   :  { %789 = vmatpush.bf16.msrb.mxu2 %v1556_v0 }
 0x1d1   :  { %v581_v19 = vpop.f32.mrf.mxu2 }
 0x1d2   :  { %v582_v20 = vadd.f32 %v1753_v18, %v581_v19  ;;  %v1723_v18 = vld [vmem:[%s2382_s17] sm:$0xff] }
 0x1d4   :  { %586 = vrot.lane.b32.xlu0 %v582_v20, %s1802_s10 }
 0x1d9   :  { %v583_v21 = vpop.f32.mrf.mxu2 }
 0x246   :  { %v587_v22 = vpop.permute.xlu0 %586 }
 0x247   :  { %1529 = vmatpush.xpose.msk.msrb.mxu3 %vm568_vm1, %v587_v22  ;;  %v1755_v22 = vld [vmem:[%s2380_s15] ss:$0 sm:$0xff] }
 0x24a   :  { %1530 = vmatmul.msk.f32.vlgmr.msrb.gmra.mxu3 %vm568_vm1, %v582_v20 }
 0x2cd   :  { %v609_v23 = vpop.f32.mrf.mxu3 }
 0x2ce   :  { %v612_v25 = vmul.f32 0.17677669, %v609_v23 }
 0x2d0   :  { %v614_v26 = vadd.f32 %v613_v24, %v612_v25 }
 0x2d2   :  { %v616_v27 = vsel %vm615_vm2, %v614_v26, -inf }
 0x2d3   :  { %617 = vmax.xlane.f32.xlu0 %v616_v27  ;;  %v828_v27 = vld [vmem:[%s2381_s16] sm:$0xff] }
 0x346   :  { %v618_v28 = vpop.xlane.xlu0 %617 }
 0x347   :  { %v619_v29 = vsub.f32 %v614_v26, %v618_v28  ;;  %v829_v28 = vld [vmem:[%s2381_s16 + $0x8] sm:$0xff] }
 0x349   :  { %v620_v30 = vmul.f32 1.442695, %v619_v29 }
 0x34b   :  { %1760 = vpow2.f32 %v620_v30 }
 0x351   :  { %v1761_v31 = vpop.eup %1760 }
 0x352   :  { %v622_v32 = vsel %vm615_vm2, %v1761_v31, 0.0 }
 0x353   :  { %623 = vadd.xlane.f32.xlu1 %v622_v32 }
 0x36c   :  { %627 = vrot.lane.b32.xlu1 %v582_v20, %s1803_s7 }
 0x3c6   :  { %v624_v34 = vpop.xlane.xlu1 %623 }
 0x3c7   :  { %1762 = vrcp.f32 %v624_v34  ;;  %v1756_v34 = vld [vmem:[%s2383_s18] ss:$0 sm:$0xff] }
 0x3cd   :  { %v1763_v35 = vpop.eup %1762 }
 0x3ce   :  { %v626_v36 = vmul.f32 %v1763_v35, %v1761_v31 }
 0x3de   :  { %v628_v37 = vpop.permute.xlu1 %627 }
 0x3df   :  { %648 = vmatpush.msra.mxu3 %v628_v37 }
 0x3e0   :  { %1531 = vmatmul.msk.f32.vlgmr.msra.gmra.mxu3 %vm615_vm2, %v626_v36 }
 0x3e1   :  { %762 = vmatpush.bf16.msrb.mxu3 %v1564_v48 }
 0x3e5   :  { %763 = vmatpush.bf16.msrb.mxu3 %v1548_v57 }
 0x3e9   :  { %856 = vmatpush.bf16.msra.mxu3 %v1723_v18  ;;  %v1604_v18 = vld [vmem:[%s2387_s22 + $0x8] sm:$0xf] }
 0x463   :  { %v650_v39 = vpop.f32.mrf.mxu3 }
 0x464   :  { %v653_v40 = vpack.c.bf16 %v650_v39, %v650_v39 }
 0x466   :  { %1540 = vmatmul.msk.bf16.vlgmr.msra.gmra.mxu0 %vm568_vm1, %v653_v40 }
 0x4e3   :  { %v686_v2 = vpop.f32.mrf.mxu0 }
 0x4e4   :  { %v687_v3 = vadd.f32 %v1754_v1, %v686_v2 }
 0x4e6   :  { %v690_v5 = vadd.f32 %v687_v3, %v2114_v15 }
 0x4e8   :  { %v691_v6 = vpack.c.bf16 %v690_v5, %v690_v5 }
 0x4ea   :  { %1573 = vmatmul.msk.bf16.vlgmr.msra.gmra.mxu2 %vm568_vm1, %v691_v6  ;;  %1574 = vmatmul.msk.bf16.vlgmr.msrb.gmra.mxu3 %vm568_vm1, %v691_v6 }
 0x4eb   :  { %1575 = vmatmul.msk.bf16.vlgmr.msrb.gmra.mxu0 %vm568_vm1, %v691_v6  ;;  %v688_v8 = vpop.f32.mrf.mxu0  ;;  %819 = vmatpush.bf16.msra.mxu2 %v810_v7 }
 0x4fa   :  { %1576 = vmatmul.msk.bf16.vlgmr.msrb.gmra.mxu2 %vm568_vm1, %v691_v6  ;;  %v1724_v6 = vld [vmem:[%s2384_s19] sm:$0xff] }
 0x4fb   :  { %986 = vmatpush.bf16.msrb.mxu2 %v1724_v6 }
 0x50a   :  { %1577 = vmatmul.msk.bf16.vlgmr.msra.gmra.mxu2 %vm804_vm4, %v798_v11  ;;  %v1598_v11 = vld [vmem:[%s2387_s22 + $0x20] sm:$0xf0] }
 0x568   :  { %v2203_v12 = vpop.f32.mrf.mxu0 }
 0x56d   :  { %v2205_v13 = vpop.f32.mrf.mxu2  ;;  %v2207_v14 = vpop.f32.mrf.mxu3 }
 0x570   :  { %v780_v15 = vpop.f32.mrf.mxu0 }
 0x571   :  { %v1601_v15 = vor.u32 %v1725_v10, %v1598_v11  ;;  %v1759_v11 = vld [vmem:[%s2391_s26] ss:$0 sm:$0xff]  ;;  %s1806_s26 = smov [#allocation2]  }
 0x575   :  { %v754_v16 = vpop.f32.mrf.mxu2  ;;  %v767_v17 = vpop.f32.mrf.mxu3 }
 0x576   :  { %v1596_v16 = vld [vmem:[%s2387_s22] sm:$0xf] }
 0x577   :  { %v1729_v17 = vld [vmem:[%s2387_s22 + $0x1c] sm:$0xf0] }
 0x57d   :  { %v2212_v19 = vpop.f32.mrf.mxu2 }
 0x585   :  { %v793_v20 = vpop.f32.mrf.mxu2 }
 0x586   :  { %v1597_v20 = vor.u32 %v1729_v17, %v1596_v16 }
 0x588   :  { %1054 = vmatpush.bf16.msrb.mxu3 %v1597_v20 }
 0x58d   :  { %v821_v21 = vpop.f32.mrf.mxu2 }
 0x58e   :  { %v822_v23 = vadd.f32 %v1755_v22, %v821_v21  ;;  %v1730_v21 = vld [vmem:[%s2387_s22 + $0x24] sm:$0xf0] }
 0x590   :  { %v826_v25 = vmax.f32 %v822_v23, 0.0  ;;  %v1606_v23 = vld [vmem:[%s2387_s22 + $0x28] sm:$0xf0] }
 0x592   :  { %v2223_v30 = vadd.f32 %v828_v27, %v826_v25  ;;  %v1614_v27 = vld [vmem:[%s2387_s22 + $0x30] sm:$0xf0] }
 0x595   :  { %v823_v24 = vpop.f32.mrf.mxu2 }
 0x596   :  { %v824_v26 = vadd.f32 %v1755_v22, %v823_v24  ;;  %v1726_v22 = vld [vmem:[%s2387_s22 + $0xc] sm:$0xf]  ;;  %v1605_v24 = vor.u32 %v1730_v21, %v1604_v18 }
 0x597   :  { %v1609_v25 = vor.u32 %v1726_v22, %v1606_v23 }
 0x598   :  { %v827_v29 = vmax.f32 %v824_v26, 0.0  ;;  %v1727_v26 = vld [vmem:[%s2387_s22 + $0x14] sm:$0xf] }
 0x599   :  { %1096 = vmatpush.bf16.msra.mxu2 %v1609_v25 }
 0x59a   :  { %v2225_v31 = vadd.f32 %v829_v28, %v827_v29  ;;  %v1617_v28 = vor.u32 %v1727_v26, %v1614_v27  ;;  %v1612_v29 = vld [vmem:[%s2387_s22 + $0x10] sm:$0xf] }
 0x59c   :  { %v832_v32 = vpack.c.bf16 %v2225_v31, %v2223_v30 }
 0x59e   :  { %1582 = vmatmul.msk.bf16.vlgmr.msra.gmra.mxu3 %vm845_vm5, %v832_v32  ;;  %v1731_v32 = vld [vmem:[%s2387_s22 + $0x2c] sm:$0xf0] }
 0x621   :  { %v858_v33 = vpop.f32.mrf.mxu3 }
 0x622   :  { %v859_v37 = vadd.f32 %v1756_v34, %v858_v33  ;;  %v1620_v33 = vld [vmem:[%s2387_s22 + $0x18] sm:$0xf] }
 0x629   :  { %v860_v35 = vpop.f32.mrf.mxu3 }
 0x62a   :  { %v861_v36 = vadd.f32 %v1756_v34, %v860_v35  ;;  %v1613_v34 = vor.u32 %v1731_v32, %v1612_v29  ;;  %v1732_v35 = vld [vmem:[%s2387_s22 + $0x34] sm:$0xf0] }
 0x62c   :  { %867 = vrot.lane.b32.xlu2 %v861_v36, %s1804_s9  ;;  %v1746_v50 = vpack.i.bf16 %v859_v37, %v861_v36  ;;  %1110 = vmatpush.bf16.msra.mxu3 %v1613_v34 }
 0x634   :  { %865 = vrot.lane.b32.xlu2 %v859_v37, %s1804_s9 }
 0x686   :  { %v868_v38 = vpop.permute.xlu2 %867 }
 0x687   :  { %1583 = vmatpush.xpose.msk.msra.mxu0 %vm845_vm5, %v868_v38  ;;  %v1621_v38 = vor.u32 %v1732_v35, %v1620_v33 }
 0x68e   :  { %v866_v39 = vpop.permute.xlu2 %865 }
 0x68f   :  { %1584 = vmatpush.xpose.msk.msra.mxu0 %vm845_vm5, %v866_v39 }
 0x692   :  { %1585 = vmatmul.msk.f32.vlgmr.msra.gmra.mxu0 %vm845_vm5, %v859_v37  ;;  %v1622_v37 = vld [vmem:[%s2387_s22 + $0x38] sm:$0xf0] }
 0x693   :  { %1068 = vmatpush.bf16.msrb.mxu0 %v1601_v15 }
 0x697   :  { %1124 = vmatpush.bf16.msra.mxu0 %v1617_v28 }
 0x69a   :  { %1586 = vmatmul.msk.f32.gmra.mxu0 %vm845_vm5, %v861_v36  ;;  %v1728_v36 = vld [vmem:[%s2387_s22 + $0x1c] sm:$0xf]  ;;  %s1330_s22 = sshll.u32 %s2392_s27, 4  ;;  %s1331_s22 = int_to_ptr.hbm [resolvable:$true] %s1330_s22 }
 0x69b   :  { %v1625_v39 = vor.u32 %v1728_v36, %v1622_v37 }
 0x70f   :  { %v894_v40 = vpop.f32.mrf.mxu0 }
 0x710   :  { %v900_v42 = vmul.f32 0.25, %v894_v40 }
 0x712   :  { %v904_v43 = vadd.f32 %v902_v41, %v900_v42  ;;  %v1757_v41 = vld [vmem:[%s2385_s20] ss:$0 sm:$0xff] }
 0x714   :  { %v906_v44 = vsel %vm845_vm5, %v904_v43, -inf }
 0x715   :  { %907 = vmax.xlane.f32.xlu2 %v906_v44 }
 0x717   :  { %v897_v45 = vpop.f32.mrf.mxu0 }
 0x718   :  { %v901_v47 = vmul.f32 0.25, %v897_v45 }
 0x71a   :  { %v905_v48 = vadd.f32 %v903_v46, %v901_v47 }
 0x71c   :  { %v909_v49 = vsel %vm845_vm5, %v905_v48, -inf }
 0x71d   :  { %910 = vmax.xlane.f32.xlu1 %v909_v49 }
 0x72d   :  { %1747 = vrot.lane.b32.xlu2 %v1746_v50, %s1802_s10 }
 0x788   :  { %v908_v51 = vpop.xlane.xlu2 %907 }
 0x789   :  { %v912_v52 = vsub.f32 %v904_v43, %v908_v51 }
 0x78b   :  { %v914_v53 = vmul.f32 1.442695, %v912_v52 }
 0x78d   :  { %1764 = vpow2.f32 %v914_v53 }
 0x790   :  { %v1748_v54 = vpop.permute.xlu2 %1747  ;;  %v911_v55 = vpop.xlane.xlu1 %910 }
 0x791   :  { %v1749_v56 = vunpack.i.l.bf16 %v1748_v54  ;;  %v913_v57 = vsub.f32 %v905_v48, %v911_v55  ;;  %v1750_v59 = vunpack.i.h.bf16 %v1748_v54  ;;  %v795_v54 = vld [vmem:[%s2378_s13] sm:$0x3]  ;;  %v1740_v55 = vld [vmem:[%s2390_s25 + $0x38] sm:$0xff] }
 0x793   :  { %v1765_v58 = vpop.eup %1764  ;;  %v916_v60 = vmul.f32 1.442695, %v913_v57  ;;  %954 = vmatpush.msra.mxu1 %v1749_v56  ;;  %v1739_v57 = vld [vmem:[%s2390_s25 + $0x30] sm:$0xff] }
 0x794   :  { %v918_v61 = vsel %vm845_vm5, %v1765_v58, 0.0 }
 0x795   :  { %1766 = vpow2.f32 %v916_v60  ;;  %919 = vadd.xlane.f32.xlu0 %v918_v61  ;;  %955 = vmatpush.msra.mxu1 %v1750_v59  ;;  %v1738_v59 = vld [vmem:[%s2390_s25 + $0x28] sm:$0xff]  ;;  %v1737_v61 = vld [vmem:[%s2390_s25 + $0x20] sm:$0xff] }
 0x797   :  { %1082 = vmatpush.bf16.msrb.mxu1 %v1605_v24 }
 0x79b   :  { %v1767_v62 = vpop.eup %1766 }
 0x79c   :  { %v921_v63 = vsel %vm845_vm5, %v1767_v62, 0.0 }
 0x79d   :  { %922 = vadd.xlane.f32.xlu0 %v921_v63  ;;  %v1736_v63 = vld [vmem:[%s2390_s25 + $0x18] sm:$0xff] }
 0x808   :  { %v920_v0 = vpop.xlane.xlu0 %919 }
 0x809   :  { %1768 = vrcp.f32 %v920_v0  ;;  %v1735_v0 = vld [vmem:[%s2390_s25 + $0x10] sm:$0xff] }
 0x80f   :  { %v1769_v1 = vpop.eup %1768 }
 0x810   :  { %v926_v2 = vmul.f32 %v1769_v1, %v1765_v58  ;;  %v923_v3 = vpop.xlane.xlu0 %922  ;;  %v1159_v1 = vld [vmem:[%s2388_s23] sm:$0x3] }
 0x811   :  { %1770 = vrcp.f32 %v923_v3  ;;  %v1733_v3 = vld [vmem:[%s2390_s25] sm:$0xff] }
 0x812   :  { %1587 = vmatmul.msk.f32.vlgmr.msra.gmra.mxu1 %vm845_vm5, %v926_v2  ;;  %v1734_v2 = vld [vmem:[%s2390_s25 + $0x8] sm:$0xff]  ;;  %s1805_s25 = smov 123  }
 0x813   :  { %1138 = vmatpush.bf16.msra.mxu1 %v1621_v38 }
 0x817   :  { %v1771_v4 = vpop.eup %1770 }
 0x818   :  { %v927_v5 = vmul.f32 %v1771_v4, %v1767_v62 }
 0x81a   :  { %1588 = vmatmul.msk.f32.gmra.mxu1 %vm845_vm5, %v927_v5  ;;  %v1758_v5 = vld [vmem:[%s2389_s24] ss:$0 sm:$0xff] }
 0x88f   :  { %v957_v7 = vpop.f32.mrf.mxu1 }
 0x897   :  { %v960_v8 = vpop.f32.mrf.mxu1 }
 0x898   :  { %v963_v9 = vpack.c.bf16 %v960_v8, %v957_v7 }
 0x89a   :  { %1593 = vmatmul.msk.bf16.vlgmr.msrb.gmra.mxu2 %vm845_vm5, %v963_v9 }
 0x89b   :  { %1152 = vmatpush.bf16.msrb.mxu2 %v1625_v39 }
 0x91d   :  { %v988_v40 = vpop.f32.mrf.mxu2 }
 0x91e   :  { %v989_v42 = vadd.f32 %v1757_v41, %v988_v40 }
 0x920   :  { %v993_v45 = vadd.f32 %v989_v42, %v2223_v30 }
 0x925   :  { %v990_v43 = vpop.f32.mrf.mxu2 }
 0x926   :  { %v991_v44 = vadd.f32 %v1757_v41, %v990_v43 }
 0x928   :  { %v994_v46 = vadd.f32 %v991_v44, %v2225_v31 }
 0x92a   :  { %v995_v47 = vpack.c.bf16 %v994_v46, %v993_v45 }
 0x92c   :  { %1626 = vmatmul.msk.bf16.vlgmr.msrb.gmra.mxu3 %vm845_vm5, %v995_v47  ;;  %1627 = vmatmul.msk.bf16.vlgmr.msrb.gmra.mxu0 %vm845_vm5, %v995_v47 }
 0x92d   :  { %1628 = vmatmul.msk.bf16.vlgmr.msrb.gmra.mxu1 %vm845_vm5, %v995_v47  ;;  %1629 = vmatmul.msk.bf16.vlgmr.msra.gmra.mxu2 %vm845_vm5, %v995_v47 }
 0x92e   :  { %1195 = vmatpush.msrb.mxu0 %v2212_v19  ;;  %1278 = vmatpush.bf16.msrb.mxu1 %v1740_v55 }
 0x930   :  { %1196 = vmatpush.msrb.mxu0 %v2203_v12 }
 0x932   :  { %1197 = vmatpush.msrb.mxu0 %v2207_v14  ;;  %1279 = vmatpush.bf16.msrb.mxu1 %v1739_v57 }
 0x934   :  { %1198 = vmatpush.msrb.mxu0 %v2205_v13 }
 0x936   :  { %1280 = vmatpush.bf16.msrb.mxu1 %v1738_v59 }
 0x93a   :  { %1281 = vmatpush.bf16.msrb.mxu1 %v1737_v61 }
 0x93c   :  { %1630 = vmatmul.msk.bf16.vlgmr.msra.gmra.mxu3 %vm845_vm5, %v995_v47  ;;  %1631 = vmatmul.msk.bf16.vlgmr.msra.gmra.mxu0 %vm845_vm5, %v995_v47 }
 0x93d   :  { %1632 = vmatmul.msk.bf16.vlgmr.msra.gmra.mxu1 %vm845_vm5, %v995_v47  ;;  %1633 = vmatmul.msk.bf16.vlgmr.msrb.gmra.mxu2 %vm845_vm5, %v995_v47 }
 0x93e   :  { %1282 = vmatpush.bf16.msrb.mxu1 %v1736_v63 }
 0x942   :  { %1283 = vmatpush.bf16.msrb.mxu1 %v1735_v0 }
 0x946   :  { %1284 = vmatpush.bf16.msrb.mxu1 %v1734_v2 }
 0x94a   :  { %1285 = vmatpush.bf16.msrb.mxu1 %v1733_v3 }
 0x94c   :  { %1634 = vmatmul.msk.f32.vlgmr.msrb.gmra.mxu0 %vm568_vm1, %v795_v54 }
 0x9a9   :  { %v1070_v48 = vpop.f32.mrf.mxu0 }
 0x9aa   :  { %v1084_v30 = vpop.f32.mrf.mxu1 }
 0x9af   :  { %v1056_v49 = vpop.f32.mrf.mxu3 }
 0x9b0   :  { %v1098_v31 = vpop.f32.mrf.mxu2 }
 0x9b1   :  { %v1072_v51 = vpop.f32.mrf.mxu0 }
 0x9b2   :  { %v1086_v50 = vpop.f32.mrf.mxu1 }
 0x9b7   :  { %v1058_v12 = vpop.f32.mrf.mxu3 }
 0x9b8   :  { %v1100_v19 = vpop.f32.mrf.mxu2 }
 0x9b9   :  { %v1126_v53 = vpop.f32.mrf.mxu0 }
 0x9ba   :  { %v1140_v14 = vpop.f32.mrf.mxu1 }
 0x9bf   :  { %v1112_v56 = vpop.f32.mrf.mxu3 }
 0x9c0   :  { %v1154_v52 = vpop.f32.mrf.mxu2 }
 0x9c1   :  { %v1128_v60 = vpop.f32.mrf.mxu0 }
 0x9c2   :  { %v1142_v58 = vpop.f32.mrf.mxu1 }
 0x9c7   :  { %v1114_v62 = vpop.f32.mrf.mxu3 }
 0x9c8   :  { %v1156_v13 = vpop.f32.mrf.mxu2 }
 0x9c9   :  { %1160 = vmatpush.msrb.mxu3 %v1156_v13  ;;  %v1200_v4 = vpop.f32.mrf.mxu0 }
 0x9cb   :  { %1161 = vmatpush.msrb.mxu3 %v1154_v52 }
 0x9cd   :  { %1162 = vmatpush.msrb.mxu3 %v1142_v58 }
 0x9cf   :  { %1163 = vmatpush.msrb.mxu3 %v1140_v14 }
 0x9d1   :  { %1164 = vmatpush.msrb.mxu3 %v1128_v60 }
 0x9d3   :  { %1165 = vmatpush.msrb.mxu3 %v1126_v53 }
 0x9d5   :  { %1166 = vmatpush.msrb.mxu3 %v1114_v62 }
 0x9d7   :  { %1167 = vmatpush.msrb.mxu3 %v1112_v56 }
 0x9d9   :  { %1168 = vmatpush.msrb.mxu3 %v1100_v19 }
 0x9db   :  { %1169 = vmatpush.msrb.mxu3 %v1098_v31 }
 0x9dd   :  { %1170 = vmatpush.msrb.mxu3 %v1086_v50 }
 0x9df   :  { %1171 = vmatpush.msrb.mxu3 %v1084_v30 }
 0x9e1   :  { %1172 = vmatpush.msrb.mxu3 %v1072_v51 }
 0x9e3   :  { %1173 = vmatpush.msrb.mxu3 %v1070_v48 }
 0x9e5   :  { %1174 = vmatpush.msrb.mxu3 %v1058_v12 }
 0x9e7   :  { %1175 = vmatpush.msrb.mxu3 %v1056_v49 }
 0x9e8   :  { %1176 = vmatmul.f32.vlgmr.msrb.gmra.mxu3 %v1159_v1 }
 0xa6b   :  { %v1177_v6 = vpop.f32.mrf.mxu3 }
 0xa6c   :  { %v1201_v7 = vadd.f32 %v1200_v4, %v1177_v6 }
 0xa6e   :  { %v1207_v8 = vadd.f32 %v1758_v5, %v1201_v7 }
 0xa70   :  { %v1208_v9 = vmax.f32 %v1207_v8, 0.0 }
 0xa72   :  { %v1209_v10 = vpack.c.bf16 %v1208_v9, %v1208_v9 }
 0xa74   :  { %1286 = vmatmul.bf16.vlgmr.msrb.gmra.mxu1 %v1209_v10 }
 0xaf1   :  { %v1287_v15 = vpop.f32.mrf.mxu1 }
 0xaf2   :  { %v1288_v16 = vadd.f32 %v1759_v11, %v1287_v15 }
 0xaf4   :  { %v1292_v17 = vsel %vm1291_vm6, %v1288_v16, -inf  ;;  %1318 = vrot.lane.b32.xlu1 %v1288_v16, %s1805_s25 }
 0xaf5   :  { %1293 = vmax.xlane.f32.xlu0 %v1292_v17 }
 0xaf9   :  { %v1289_v18 = vpop.f32.mrf.mxu1 }
 0xb66   :  { %v1319_v20 = vpop.permute.xlu1 %1318 }
 0xb67   :  { %1322 = vst.msk [vmem:[%s2393_s28] sm:$0x3] %vm1321_vm7, %v1319_v20  ;;  %s1328_s28 = sshll.u32 %s1806_s26, 4  ;;  %s1329_s28 = int_to_ptr.vmem [resolvable:$true] %s1328_s28 }
 0xb68   :  { %v1294_v21 = vpop.xlane.xlu0 %1293 }
 0xb69   :  { %v1295_v22 = vsub.f32 %v1288_v16, %v1294_v21 }
 0xb6b   :  { %v1296_v23 = vmul.f32 1.442695, %v1295_v22 }
 0xb6d   :  { %1772 = vpow2.f32 %v1296_v23 }
 0xb73   :  { %v1773_v24 = vpop.eup %1772 }
 0xb74   :  { %v1298_v25 = vsel %vm1291_vm6, %v1773_v24, 0.0 }
 0xb75   :  { %1299 = vadd.xlane.f32.xlu0 %v1298_v25 }
 0xbe8   :  { %v1300_v26 = vpop.xlane.xlu0 %1299 }
 0xbe9   :  { %1774 = vrcp.f32 %v1300_v26  ;;  %v1312_v32 = vand.u32 2147483648, %v1300_v26  ;;  %v1310_v34 = vand.u32 2147483647, %v1300_v26  ;;  %vm1306_vm9 = vweird.f32 %v1300_v26 }
 0xbeb   :  { %v1313_v36 = vor.u32 1.1754944e-38, %v1312_v32  ;;  %vm1311_vm11 = vcmp.eq.f32.partialorder %v1310_v34, 8.507059e+37 }
 0xbef   :  { %v1775_v27 = vpop.eup %1774 }
 0xbf0   :  { %v1302_v28 = vmul.f32 %v1775_v27, %v1300_v26  ;;  %vm1307_vm8 = vweird.f32 %v1775_v27 }
 0xbf1   :  { %vm1308_vm10 = vmor %vm1306_vm9, %vm1307_vm8 }
 0xbf2   :  { %v1303_v29 = vsub.f32 1.0, %v1302_v28 }
 0xbf4   :  { %v1304_v33 = vmul.f32 %v1775_v27, %v1303_v29 }
 0xbf6   :  { %v1305_v35 = vadd.f32 %v1775_v27, %v1304_v33 }
 0xbf8   :  { %v1309_v37 = vsel %vm1308_vm10, %v1775_v27, %v1305_v35 }
 0xbf9   :  { %v1314_v38 = vsel %vm1311_vm11, %v1313_v36, %v1309_v37 }
 0xbfa   :  { %v1315_v39 = vmul.f32 %v1773_v24, %v1314_v38 }
 0xbfc   :  { %1316 = vst.msk [vmem:[#allocation2] sm:$0x3] %vm1291_vm6, %v1315_v39 }
 0xbfd   :  { %1333 = dma.vmem_to_hbm [thread:$0]  %s1329_s28, 32, %s1331_s22, [#allocation3]  }
 0xbfe   :  { %1800 = dma.done.wait [#allocation3], 32  }
 0xbff   :  { %1801 = vsyncadd [#allocation3], 4294967264 }
 0xc00   :  { %1342 = vsyncpa [#allocation3], 1 }

</bundles_post_ra>
